<compile_context>
chip_gen: v5e
topology: v5e:2x2
jax: 0.10.0
libtpu: 0.0.40
codegen_flags: <defaults>
</compile_context>

<pallas_src>
import functools
import math

import jax
import jax.numpy as jnp
from jax.experimental import pallas as pl
from jax.experimental.pallas import tpu as pltpu


# ESPnet-style LayerNorm uses eps=1e-12 (plain torch.nn.LayerNorm default would be 1e-5).
LN_EPS = 1e-12
# 48 MiB scoped VMEM: leaves headroom under v7x's 64 MiB physical VMEM while still
# allowing 512-row tiles + resident bf16 weights (v5e/v6e have 128 MiB physical).
VMEM_LIMIT = 48 * 1024 * 1024
TIME_TILE_TARGET = 512   # 512-row tiles ~85% of HBM roofline on mem-bound passes


def _pick_tile(dim, target=TIME_TILE_TARGET, align=8):
    """Largest tile <= target that divides `dim` and is a multiple of `align`,
    falling back to the full dimension (full-extent blocks are always legal)."""
    if dim <= target:
        return dim
    t = (target // align) * align
    while t >= align:
        if dim % t == 0:
            return t
        t -= align
    return dim


def _layer_norm(x, g, b, eps):
    """f32 LayerNorm over the last (feature) dim."""
    x = x.astype(jnp.float32)
    mu = jnp.mean(x, axis=-1, keepdims=True)
    var = jnp.mean((x - mu) ** 2, axis=-1, keepdims=True)
    return (x - mu) * jax.lax.rsqrt(var + eps) * g + b


# ----------------------------- Pallas kernels ------------------------------

def _embed_pe_kernel(x_ref, w_ref, b_ref, pe_ref, o_ref, *, scale):
    """Embed Linear fused with positional encoding: (x @ W + b) * sqrt(d) + pe."""
    x = x_ref[0]                                                         # (tt, K) bf16
    y = jnp.dot(x, w_ref[...], preferred_element_type=jnp.float32)      # (tt, D) f32
    o_ref[0] = (y + b_ref[...]) * scale + pe_ref[...]


def _qkv_kernel(x_ref, g_ref, b_ref, wqkv_ref, bqkv_ref, qkv_ref, *, eps):
    """LN1 prologue + fused QKV projection, emitted once in bf16 (single cast)."""
    xn = _layer_norm(x_ref[0], g_ref[...], b_ref[...], eps).astype(jnp.bfloat16)
    qkv = jnp.dot(xn, wqkv_ref[...],
                  preferred_element_type=jnp.float32) + bqkv_ref[...]   # (tt, 3D) f32
    qkv_ref[0] = qkv.astype(jnp.bfloat16)


def _flash_attn_kernel(q_ref, k_ref, v_ref, x_ref, wo_ref, bo_ref, o_ref,
                       m_sc, l_sc, acc_sc, *, n_head, sm_scale):
    """Flash-style self-attention for one (batch, q-tile): online softmax over kv tiles.
    Per-head context is written into a (tq, D) VMEM slab at static lane offsets; the
    output projection runs ONCE as a full-D matmul at the last kv step, followed by
    bias + residual: out = x + Wo(MHA(LN1(x)))."""
    kv = pl.program_id(2)

    @pl.when(kv == 0)
    def _():
        m_sc[...] = jnp.full_like(m_sc, -jnp.inf)
        l_sc[...] = jnp.zeros_like(l_sc)
        acc_sc[...] = jnp.zeros_like(acc_sc)

    q = q_ref[0]                                                         # (tq, D) bf16
    k = k_ref[0]                                                         # (tk, D) bf16
    v = v_ref[0]                                                         # (tk, D) bf16
    D = q.shape[-1]
    dh = D // n_head

    # TODO(synk): attention mask path (mask is not None) is not implemented.
    for h in range(n_head):
        sl = slice(h * dh, (h + 1) * dh)
        # contract head dims directly -> no in-kernel transpose of K
        s = jax.lax.dot_general(q[:, sl], k[:, sl], (((1,), (1,)), ((), ())),
                                preferred_element_type=jnp.float32) * sm_scale
        m_prev = m_sc[h]                                                 # (tq, 1)
        m_new = jnp.maximum(m_prev, jnp.max(s, axis=-1, keepdims=True))
        alpha = jnp.exp(m_prev - m_new)
        p = jnp.exp(s - m_new)
        l_sc[h] = alpha * l_sc[h] + jnp.sum(p, axis=-1, keepdims=True)
        acc_sc[:, sl] = alpha * acc_sc[:, sl] + jnp.dot(
            p.astype(jnp.bfloat16), v[:, sl], preferred_element_type=jnp.float32)
        m_sc[h] = m_new

    @pl.when(kv == pl.num_programs(2) - 1)
    def _():
        # normalize each head's slab columns, then one full-D output projection
        for h in range(n_head):
            sl = slice(h * dh, (h + 1) * dh)
            acc_sc[:, sl] = acc_sc[:, sl] * pl.reciprocal(l_sc[h], approx=True)
        out = jnp.dot(acc_sc[...].astype(jnp.bfloat16), wo_ref[...],
                      preferred_element_type=jnp.float32)
        o_ref[0] = out + bo_ref[...] + x_ref[0]


def _ffn_compute(x_ref, g_ref, b_ref, w1_ref, b1_ref, w2_ref, b2_ref, eps):
    """Pre-norm FFN: x + W2(relu(W1(LN2(x)))). The (tt, ff_dim) intermediate stays in VMEM."""
    x = x_ref[0]                                                         # (tt, D) f32
    xn = _layer_norm(x, g_ref[...], b_ref[...], eps).astype(jnp.bfloat16)
    h = jnp.dot(xn, w1_ref[...], preferred_element_type=jnp.float32) + b1_ref[...]
    h = jnp.maximum(h, 0.0).astype(jnp.bfloat16)
    y = jnp.dot(h, w2_ref[...], preferred_element_type=jnp.float32) + b2_ref[...]
    return y + x


def _ffn_block_kernel(x_ref, g_ref, b_ref, w1_ref, b1_ref, w2_ref, b2_ref,
                      o_ref, *, eps):
    o_ref[0] = _ffn_compute(x_ref, g_ref, b_ref, w1_ref, b1_ref, w2_ref, b2_ref, eps)


def _ffn_after_norm_kernel(x_ref, g_ref, b_ref, w1_ref, b1_ref, w2_ref, b2_ref,
                           ag_ref, ab_ref, o_ref, *, eps):
    """FFN sub-block with the trailing after_norm fused (last layer only)."""
    y = _ffn_compute(x_ref, g_ref, b_ref, w1_ref, b1_ref, w2_ref, b2_ref, eps)
    o_ref[0] = _layer_norm(y, ag_ref[...], ab_ref[...], eps)


# ----------------------------- Pallas wrappers -----------------------------

def pallas_embed_pe(x, w_bf16, b, pe, scale):
    """x: (B, Tp, K) bf16 -> (B, Tp, D) f32 ; fuses embed Linear + PE."""
    B, T, K = x.shape
    D = w_bf16.shape[1]
    tt = _pick_tile(T)
    grid = (B, T // tt)
    return pl.pallas_call(
        functools.partial(_embed_pe_kernel, scale=scale),
        grid=grid,
        in_specs=[
            pl.BlockSpec((1, tt, K), lambda i, j: (i, j, 0)),
            pl.BlockSpec((K, D), lambda i, j: (0, 0)),
            pl.BlockSpec((1, D), lambda i, j: (0, 0)),
            pl.BlockSpec((tt, D), lambda i, j: (j, 0)),   # single pe copy in HBM
        ],
        out_specs=pl.BlockSpec((1, tt, D), lambda i, j: (i, j, 0)),
        out_shape=jax.ShapeDtypeStruct((B, T, D), jnp.float32),
        compiler_params=pltpu.CompilerParams(
            dimension_semantics=("parallel", "parallel"),
            vmem_limit_bytes=VMEM_LIMIT),
    )(x, w_bf16, b, pe)


def pallas_qkv(x, g, b, w_qkv, b_qkv):
    """x: (B, T, D) f32 -> (B, T, 3D) bf16 ; LN1 + fused QKV projection."""
    B, T, D = x.shape
    tt = _pick_tile(T)
    grid = (B, T // tt)
    full = lambda shape: pl.BlockSpec(shape, lambda i, j: (0, 0))
    return pl.pallas_call(
        functools.partial(_qkv_kernel, eps=LN_EPS),
        grid=grid,
        in_specs=[
            pl.BlockSpec((1, tt, D), lambda i, j: (i, j, 0)),
            full((1, D)), full((1, D)),
            full((D, 3 * D)), full((1, 3 * D)),
        ],
        out_specs=pl.BlockSpec((1, tt, 3 * D), lambda i, j: (i, j, 0)),
        out_shape=jax.ShapeDtypeStruct((B, T, 3 * D), jnp.bfloat16),
        compiler_params=pltpu.CompilerParams(
            dimension_semantics=("parallel", "parallel"),
            vmem_limit_bytes=VMEM_LIMIT),
    )(x, g, b, w_qkv, b_qkv)


def pallas_flash_attention(x, qkv, w_o, b_o, n_head):
    """x: (B, T, D) f32 residual stream, qkv: (B, T, 3D) bf16.
    Flash-tiled attention + output projection + residual; q/k/v are sliced out of the
    same qkv buffer purely via BlockSpec index maps (last-dim block index 0/1/2)."""
    B, T, D = x.shape
    dh = D // n_head
    tq = _pick_tile(T)
    tk = _pick_tile(T)
    grid = (B, T // tq, T // tk)        # kv (reduction) axis last
    full = lambda shape: pl.BlockSpec(shape, lambda b, i, j: (0, 0))
    return pl.pallas_call(
        functools.partial(_flash_attn_kernel, n_head=n_head,
                          sm_scale=1.0 / math.sqrt(dh)),
        grid=grid,
        in_specs=[
            pl.BlockSpec((1, tq, D), lambda b, i, j: (b, i, 0)),   # q
            pl.BlockSpec((1, tk, D), lambda b, i, j: (b, j, 1)),   # k
            pl.BlockSpec((1, tk, D), lambda b, i, j: (b, j, 2)),   # v
            pl.BlockSpec((1, tq, D), lambda b, i, j: (b, i, 0)),   # residual x
            full((D, D)), full((1, D)),
        ],
        out_specs=pl.BlockSpec((1, tq, D), lambda b, i, j: (b, i, 0)),
        out_shape=jax.ShapeDtypeStruct((B, T, D), jnp.float32),
        scratch_shapes=[
            pltpu.VMEM((n_head, tq, 1), jnp.float32),   # running max per head
            pltpu.VMEM((n_head, tq, 1), jnp.float32),   # running denom per head
            pltpu.VMEM((tq, D), jnp.float32),           # context slab (heads at lane offsets)
        ],
        compiler_params=pltpu.CompilerParams(
            dimension_semantics=("parallel", "parallel", "arbitrary"),
            vmem_limit_bytes=VMEM_LIMIT),
    )(qkv, qkv, qkv, x, w_o, b_o)


def pallas_ffn_block(x, g, b, w1, b1, w2, b2, after_g=None, after_b=None):
    """x: (B, T, D) f32 -> (B, T, D) f32 ; tiled over (batch, time).
    If after_g/after_b are provided, the trailing after_norm is fused into this pass."""
    B, T, D = x.shape
    F = w1.shape[1]
    tt = _pick_tile(T)
    grid = (B, T // tt)
    full = lambda shape: pl.BlockSpec(shape, lambda i, j: (0, 0))
    fuse_after = after_g is not None
    in_specs = [
        pl.BlockSpec((1, tt, D), lambda i, j: (i, j, 0)),
        full((1, D)), full((1, D)),
        full((D, F)), full((1, F)),
        full((F, D)), full((1, D)),
    ]
    args = [x, g, b, w1, b1, w2, b2]
    if fuse_after:
        in_specs += [full((1, D)), full((1, D))]
        args += [after_g, after_b]
        kernel = functools.partial(_ffn_after_norm_kernel, eps=LN_EPS)
    else:
        kernel = functools.partial(_ffn_block_kernel, eps=LN_EPS)
    return pl.pallas_call(
        kernel,
        grid=grid,
        in_specs=in_specs,
        out_specs=pl.BlockSpec((1, tt, D), lambda i, j: (i, j, 0)),
        out_shape=jax.ShapeDtypeStruct((B, T, D), jnp.float32),
        compiler_params=pltpu.CompilerParams(
            dimension_semantics=("parallel", "parallel"),
            vmem_limit_bytes=VMEM_LIMIT),
    )(*args)


# ----------------------------- Model glue (plain JAX) ----------------------

def conv2d_relu(x_nchw, weight, bias, stride=2):
    """PyTorch-semantics Conv2d(kernel=3, stride=2, no padding) + ReLU.
    Left to XLA: the subsampling convs (contraction dim as small as C_in*9=9)
    underutilize the MXU and im2col would inflate HBM traffic 9x."""
    y = jax.lax.conv_general_dilated(
        x_nchw, weight, window_strides=(stride, stride), padding="VALID",
        dimension_numbers=("NCHW", "OIHW", "NCHW"))
    return jnp.maximum(y + bias[None, :, None, None], 0.0)


def sinusoidal_pe(T, D):
    pos = jnp.arange(T, dtype=jnp.float32)[:, None]
    div = jnp.exp(jnp.arange(0, D, 2, dtype=jnp.float32) * (-math.log(10000.0) / D))
    pe = jnp.zeros((T, D), dtype=jnp.float32)
    pe = pe.at[:, 0::2].set(jnp.sin(pos * div))
    pe = pe.at[:, 1::2].set(jnp.cos(pos * div))
    return pe


def init_params(key, i_dim, h_dim, ff_dim, n_layer):
    f1 = (i_dim - 1) // 2
    f2 = (f1 - 1) // 2
    keys = jax.random.split(key, 4 + n_layer)

    def nrm(k, shape, scale=0.1):
        return scale * jax.random.normal(k, shape, dtype=jnp.float32)

    params = {
        "conv1_w": nrm(keys[0], (h_dim, 1, 3, 3)),
        "conv1_b": jnp.zeros((h_dim,), jnp.float32),
        "conv2_w": nrm(keys[1], (h_dim, h_dim, 3, 3)),
        "conv2_b": jnp.zeros((h_dim,), jnp.float32),
        "embed_w": nrm(keys[2], (h_dim * f2, h_dim)),   # Linear stored as (in, out)
        "embed_b": jnp.zeros((h_dim,), jnp.float32),
        "after_g": jnp.ones((h_dim,), jnp.float32),
        "after_b": jnp.zeros((h_dim,), jnp.float32),
        "layers": [],
    }
    for l in range(n_layer):
        lk = jax.random.split(keys[3 + l], 6)
        params["layers"].append({
            "wq": nrm(lk[0], (h_dim, h_dim)), "bq": jnp.zeros((h_dim,), jnp.float32),
            "wk": nrm(lk[1], (h_dim, h_dim)), "bk": jnp.zeros((h_dim,), jnp.float32),
            "wv": nrm(lk[2], (h_dim, h_dim)), "bv": jnp.zeros((h_dim,), jnp.float32),
            "wo": nrm(lk[3], (h_dim, h_dim)), "bo": jnp.zeros((h_dim,), jnp.float32),
            "w1": nrm(lk[4], (h_dim, ff_dim)), "b1": jnp.zeros((ff_dim,), jnp.float32),
            "w2": nrm(lk[5], (ff_dim, h_dim)), "b2": jnp.zeros((h_dim,), jnp.float32),
            "ln1_g": jnp.ones((h_dim,), jnp.float32), "ln1_b": jnp.zeros((h_dim,), jnp.float32),
            "ln2_g": jnp.ones((h_dim,), jnp.float32), "ln2_b": jnp.zeros((h_dim,), jnp.float32),
        })
    return params


def prepare_params(params):
    """One-time weight preprocessing: fuse QKV weights into one (D, 3D) matmul,
    pre-cast MXU operands to bf16 (f32 accumulation stays in-kernel), reshape
    biases / LN params to (1, N) rows for broadcasting.
    NOTE: deployed configs should keep D, 3D and F multiples of 128 (lane-dense stores)."""
    D = params["embed_w"].shape[1]
    fp = {
        "conv1_w": params["conv1_w"], "conv1_b": params["conv1_b"],
        "conv2_w": params["conv2_w"], "conv2_b": params["conv2_b"],
        "embed_w": params["embed_w"].astype(jnp.bfloat16),
        "embed_b": params["embed_b"].reshape(1, D),
        "after_g": params["after_g"].reshape(1, D),
        "after_b": params["after_b"].reshape(1, D),
        "layers": [],
    }
    for lp in params["layers"]:
        F = lp["w1"].shape[1]
        fp["layers"].append({
            "w_qkv": jnp.concatenate([lp["wq"], lp["wk"], lp["wv"]], axis=1).astype(jnp.bfloat16),
            "b_qkv": jnp.concatenate([lp["bq"], lp["bk"], lp["bv"]]).reshape(1, 3 * D),
            "w_o": lp["wo"].astype(jnp.bfloat16), "b_o": lp["bo"].reshape(1, D),
            "w1": lp["w1"].astype(jnp.bfloat16), "b1": lp["b1"].reshape(1, F),
            "w2": lp["w2"].astype(jnp.bfloat16), "b2": lp["b2"].reshape(1, D),
            "ln1_g": lp["ln1_g"].reshape(1, D), "ln1_b": lp["ln1_b"].reshape(1, D),
            "ln2_g": lp["ln2_g"].reshape(1, D), "ln2_b": lp["ln2_b"].reshape(1, D),
        })
    return fp


def transformer_encoder(fp, x, n_head, mask=None):
    """x: (batch, time, feature) float32. Pre-norm transformer layers with trailing
    after_norm, matching the PyTorch module (inference: dropouts are identity)."""
    assert mask is None  # TODO(synk): attention mask path (mask is not None) not implemented.
    D = fp["embed_w"].shape[1]

    # --- Conv2DLayer: Conv2d subsampling (x2, kernel 3, stride 2, ReLU) ---
    h = conv2d_relu(x[:, None, :, :], fp["conv1_w"], fp["conv1_b"])
    h = conv2d_relu(h, fp["conv2_w"], fp["conv2_b"])
    Bc, C, Tp, Fp = h.shape
    # torch: transpose(1,2).view ; emit bf16 so the embed kernel moves half the bytes
    h = h.transpose(0, 2, 1, 3).reshape(Bc, Tp, C * Fp).astype(jnp.bfloat16)

    # --- embed Linear fused with positional encoding (x*sqrt(d) + pe) ---
    pe = sinusoidal_pe(Tp, D)
    h = pallas_embed_pe(h, fp["embed_w"], fp["embed_b"], pe, scale=math.sqrt(D))

    # --- Transformer encoder layers: QKV / flash-attn / FFN Pallas kernels ---
    n_layers = len(fp["layers"])
    for li, lp in enumerate(fp["layers"]):
        qkv = pallas_qkv(h, lp["ln1_g"], lp["ln1_b"], lp["w_qkv"], lp["b_qkv"])
        h = pallas_flash_attention(h, qkv, lp["w_o"], lp["b_o"], n_head)
        last = (li == n_layers - 1)
        # after_norm is fused into the final layer's FFN pass (no standalone LN kernel)
        h = pallas_ffn_block(h, lp["ln2_g"], lp["ln2_b"],
                             lp["w1"], lp["b1"], lp["w2"], lp["b2"],
                             after_g=fp["after_g"] if last else None,
                             after_b=fp["after_b"] if last else None)
    return h


if __name__ == "__main__":
    # Small but lane-dense config: D=128 keeps all feature dims multiples of 128.
    B, T, i_dim = 2, 16, 16
    h_dim, ff_dim, n_head, n_layer = 128, 256, 2, 2

    key = jax.random.PRNGKey(0)
    kx, kp = jax.random.split(key)
    x = jax.random.normal(kx, (B, T, i_dim), dtype=jnp.float32)
    params = init_params(kp, i_dim, h_dim, ff_dim, n_layer)
    fparams = prepare_params(params)

    fwd = jax.jit(lambda p_, x_: transformer_encoder(p_, x_, n_head))
    out = fwd(fparams, x)
    out = jax.block_until_ready(out)

    # After two (k=3, s=2) convs: T 16 -> 7 -> 3
    assert out.shape == (B, 3, h_dim), out.shape
    assert bool(jnp.all(jnp.isfinite(out)))
    print("KERNEL_OK")
</pallas_src>

<mosaic_0001>
module attributes {stable_mosaic.version = 11 : i64} {
  func.func @_embed_pe_kernel(%arg0: i32, %arg1: i32, %arg2: memref<1x3x384xbf16, #tpu.memory_space<vmem>>, %arg3: memref<384x128xbf16, #tpu.memory_space<vmem>>, %arg4: memref<1x128xf32, #tpu.memory_space<vmem>>, %arg5: memref<3x128xf32, #tpu.memory_space<vmem>>, %arg6: memref<1x3x128xf32, #tpu.memory_space<vmem>>) attributes {dimension_semantics = [#tpu.dimension_semantics<parallel>, #tpu.dimension_semantics<parallel>], iteration_bounds = array<i64: 2, 1>, scalar_prefetch = 0 : i64, scratch_operands = 0 : i64, tpu.core_type = #tpu.core_type<tc>, window_params = [{transform_indices = @transform_0, window_bounds = array<i64: 1, 3, 384>}, {pipeline_mode = #tpu.pipeline_mode<synchronous>, transform_indices = @transform_1, window_bounds = array<i64: 384, 128>}, {pipeline_mode = #tpu.pipeline_mode<synchronous>, transform_indices = @transform_2, window_bounds = array<i64: 1, 128>}, {transform_indices = @transform_3, window_bounds = array<i64: 3, 128>}, {transform_indices = @transform_4, window_bounds = array<i64: 1, 3, 128>}]} {
    %c0 = arith.constant 0 : index
    %c0_0 = arith.constant 0 : index
    %c0_1 = arith.constant 0 : index
    %0 = vector.load %arg2[%c0, %c0_0, %c0_1] : memref<1x3x384xbf16, #tpu.memory_space<vmem>>, vector<1x3x384xbf16>
    %1 = vector.shape_cast %0 : vector<1x3x384xbf16> to vector<3x384xbf16>
    %c0_2 = arith.constant 0 : index
    %c0_3 = arith.constant 0 : index
    %2 = vector.load %arg3[%c0_2, %c0_3] : memref<384x128xbf16, #tpu.memory_space<vmem>>, vector<384x128xbf16>
    %cst = arith.constant dense<0.000000e+00> : vector<3x128xf32>
    %3 = tpu.matmul %1, %2, %cst {dimension_numbers = #tpu.dot_dimension_numbers<[1], [0], [0], [1], [0, 0, 1, 1], [], []>} : vector<3x384xbf16>, vector<384x128xbf16>, vector<3x128xf32> -> vector<3x128xf32>
    %c0_4 = arith.constant 0 : index
    %c0_5 = arith.constant 0 : index
    %4 = vector.load %arg4[%c0_4, %c0_5] : memref<1x128xf32, #tpu.memory_space<vmem>>, vector<1x128xf32>
    %5 = vector.broadcast %4 : vector<1x128xf32> to vector<3x128xf32>
    %6 = arith.addf %3, %5 : vector<3x128xf32>
    %cst_6 = arith.constant 11.3137083 : f32
    %7 = vector.broadcast %cst_6 : f32 to vector<3x128xf32>
    %8 = arith.mulf %6, %7 : vector<3x128xf32>
    %c0_7 = arith.constant 0 : index
    %c0_8 = arith.constant 0 : index
    %9 = vector.load %arg5[%c0_7, %c0_8] : memref<3x128xf32, #tpu.memory_space<vmem>>, vector<3x128xf32>
    %10 = arith.addf %8, %9 : vector<3x128xf32>
    %c0_9 = arith.constant 0 : index
    %c0_10 = arith.constant 0 : index
    %c0_11 = arith.constant 0 : index
    %11 = vector.load %arg6[%c0_9, %c0_10, %c0_11] : memref<1x3x128xf32, #tpu.memory_space<vmem>>, vector<1x3x128xf32>
    %12 = vector.shape_cast %11 : vector<1x3x128xf32> to vector<3x128xf32>
    %13 = vector.shape_cast %10 : vector<3x128xf32> to vector<1x3x128xf32>
    tpu.vector_store %arg6[%c0_9, %c0_10, %c0_11], %13 {strides = array<i32>} : memref<1x3x128xf32, #tpu.memory_space<vmem>>, vector<1x3x128xf32>,
    return
  }
  func.func @transform_0(%arg0: i32, %arg1: i32) -> (i32, i32, i32) {
    %c0_i32 = arith.constant 0 : i32
    %c0_i32_0 = arith.constant 0 : i32
    return %arg0, %arg1, %c0_i32 : i32, i32, i32
  }
  func.func @transform_1(%arg0: i32, %arg1: i32) -> (i32, i32) {
    %c0_i32 = arith.constant 0 : i32
    %c0_i32_0 = arith.constant 0 : i32
    %c0_i32_1 = arith.constant 0 : i32
    return %c0_i32, %c0_i32_0 : i32, i32
  }
  func.func @transform_2(%arg0: i32, %arg1: i32) -> (i32, i32) {
    %c0_i32 = arith.constant 0 : i32
    %c0_i32_0 = arith.constant 0 : i32
    %c0_i32_1 = arith.constant 0 : i32
    return %c0_i32, %c0_i32_0 : i32, i32
  }
  func.func @transform_3(%arg0: i32, %arg1: i32) -> (i32, i32) {
    %c0_i32 = arith.constant 0 : i32
    %c0_i32_0 = arith.constant 0 : i32
    return %arg1, %c0_i32 : i32, i32
  }
  func.func @transform_4(%arg0: i32, %arg1: i32) -> (i32, i32, i32) {
    %c0_i32 = arith.constant 0 : i32
    %c0_i32_0 = arith.constant 0 : i32
    return %arg0, %arg1, %c0_i32 : i32, i32, i32
  }
}

module attributes {stable_mosaic.version = 11 : i64} {
  func.func @_qkv_kernel(%arg0: i32, %arg1: i32, %arg2: memref<1x3x128xf32, #tpu.memory_space<vmem>>, %arg3: memref<1x128xf32, #tpu.memory_space<vmem>>, %arg4: memref<1x128xf32, #tpu.memory_space<vmem>>, %arg5: memref<128x384xbf16, #tpu.memory_space<vmem>>, %arg6: memref<1x384xf32, #tpu.memory_space<vmem>>, %arg7: memref<1x3x384xbf16, #tpu.memory_space<vmem>>) attributes {dimension_semantics = [#tpu.dimension_semantics<parallel>, #tpu.dimension_semantics<parallel>], iteration_bounds = array<i64: 2, 1>, scalar_prefetch = 0 : i64, scratch_operands = 0 : i64, tpu.core_type = #tpu.core_type<tc>, window_params = [{transform_indices = @transform_0, window_bounds = array<i64: 1, 3, 128>}, {pipeline_mode = #tpu.pipeline_mode<synchronous>, transform_indices = @transform_1, window_bounds = array<i64: 1, 128>}, {pipeline_mode = #tpu.pipeline_mode<synchronous>, transform_indices = @transform_2, window_bounds = array<i64: 1, 128>}, {pipeline_mode = #tpu.pipeline_mode<synchronous>, transform_indices = @transform_3, window_bounds = array<i64: 128, 384>}, {pipeline_mode = #tpu.pipeline_mode<synchronous>, transform_indices = @transform_4, window_bounds = array<i64: 1, 384>}, {transform_indices = @transform_5, window_bounds = array<i64: 1, 3, 384>}]} {
    %c0 = arith.constant 0 : index
    %c0_0 = arith.constant 0 : index
    %c0_1 = arith.constant 0 : index
    %0 = vector.load %arg2[%c0, %c0_0, %c0_1] : memref<1x3x128xf32, #tpu.memory_space<vmem>>, vector<1x3x128xf32>
    %1 = vector.shape_cast %0 : vector<1x3x128xf32> to vector<3x128xf32>
    %c0_2 = arith.constant 0 : index
    %c0_3 = arith.constant 0 : index
    %2 = vector.load %arg3[%c0_2, %c0_3] : memref<1x128xf32, #tpu.memory_space<vmem>>, vector<1x128xf32>
    %c0_4 = arith.constant 0 : index
    %c0_5 = arith.constant 0 : index
    %3 = vector.load %arg4[%c0_4, %c0_5] : memref<1x128xf32, #tpu.memory_space<vmem>>, vector<1x128xf32>
    %cst = arith.constant dense<0.000000e+00> : vector<3xf32>
    %4 = vector.multi_reduction <add>, %1, %cst [1] : vector<3x128xf32> to vector<3xf32>
    %5 = vector.shape_cast %4 : vector<3xf32> to vector<3x1xf32>
    %cst_6 = arith.constant 1.280000e+02 : f32
    %6 = vector.broadcast %cst_6 : f32 to vector<3x1xf32>
    %7 = arith.divf %5, %6 : vector<3x1xf32>
    %8 = vector.broadcast %7 : vector<3x1xf32> to vector<3x128xf32>
    %9 = arith.subf %1, %8 : vector<3x128xf32>
    %10 = arith.mulf %9, %9 : vector<3x128xf32>
    %cst_7 = arith.constant dense<0.000000e+00> : vector<3xf32>
    %11 = vector.multi_reduction <add>, %10, %cst_7 [1] : vector<3x128xf32> to vector<3xf32>
    %12 = vector.shape_cast %11 : vector<3xf32> to vector<3x1xf32>
    %cst_8 = arith.constant 1.280000e+02 : f32
    %13 = vector.broadcast %cst_8 : f32 to vector<3x1xf32>
    %14 = arith.divf %12, %13 : vector<3x1xf32>
    %15 = vector.broadcast %7 : vector<3x1xf32> to vector<3x128xf32>
    %16 = arith.subf %1, %15 : vector<3x128xf32>
    %cst_9 = arith.constant 9.99999996E-13 : f32
    %17 = vector.broadcast %cst_9 : f32 to vector<3x1xf32>
    %18 = arith.addf %14, %17 : vector<3x1xf32>
    %19 = math.rsqrt %18 : vector<3x1xf32>
    %20 = vector.broadcast %19 : vector<3x1xf32> to vector<3x128xf32>
    %21 = arith.mulf %16, %20 : vector<3x128xf32>
    %22 = vector.broadcast %2 : vector<1x128xf32> to vector<3x128xf32>
    %23 = arith.mulf %21, %22 : vector<3x128xf32>
    %24 = vector.broadcast %3 : vector<1x128xf32> to vector<3x128xf32>
    %25 = arith.addf %23, %24 : vector<3x128xf32>
    %26 = arith.truncf %25 : vector<3x128xf32> to vector<3x128xbf16>
    %c0_10 = arith.constant 0 : index
    %c0_11 = arith.constant 0 : index
    %27 = vector.load %arg5[%c0_10, %c0_11] : memref<128x384xbf16, #tpu.memory_space<vmem>>, vector<128x384xbf16>
    %cst_12 = arith.constant dense<0.000000e+00> : vector<3x384xf32>
    %28 = tpu.matmul %26, %27, %cst_12 {dimension_numbers = #tpu.dot_dimension_numbers<[1], [0], [0], [1], [0, 0, 1, 1], [], []>} : vector<3x128xbf16>, vector<128x384xbf16>, vector<3x384xf32> -> vector<3x384xf32>
    %c0_13 = arith.constant 0 : index
    %c0_14 = arith.constant 0 : index
    %29 = vector.load %arg6[%c0_13, %c0_14] : memref<1x384xf32, #tpu.memory_space<vmem>>, vector<1x384xf32>
    %30 = vector.broadcast %29 : vector<1x384xf32> to vector<3x384xf32>
    %31 = arith.addf %28, %30 : vector<3x384xf32>
    %32 = arith.truncf %31 : vector<3x384xf32> to vector<3x384xbf16>
    %c0_15 = arith.constant 0 : index
    %c0_16 = arith.constant 0 : index
    %c0_17 = arith.constant 0 : index
    %33 = vector.load %arg7[%c0_15, %c0_16, %c0_17] : memref<1x3x384xbf16, #tpu.memory_space<vmem>>, vector<1x3x384xbf16>
    %34 = vector.shape_cast %33 : vector<1x3x384xbf16> to vector<3x384xbf16>
    %35 = vector.shape_cast %32 : vector<3x384xbf16> to vector<1x3x384xbf16>
    tpu.vector_store %arg7[%c0_15, %c0_16, %c0_17], %35 {strides = array<i32>} : memref<1x3x384xbf16, #tpu.memory_space<vmem>>, vector<1x3x384xbf16>,
    return
  }
  func.func @transform_0(%arg0: i32, %arg1: i32) -> (i32, i32, i32) {
    %c0_i32 = arith.constant 0 : i32
    %c0_i32_0 = arith.constant 0 : i32
    return %arg0, %arg1, %c0_i32 : i32, i32, i32
  }
  func.func @transform_1(%arg0: i32, %arg1: i32) -> (i32, i32) {
    %c0_i32 = arith.constant 0 : i32
    %c0_i32_0 = arith.constant 0 : i32
    %c0_i32_1 = arith.constant 0 : i32
    return %c0_i32, %c0_i32_0 : i32, i32
  }
  func.func @transform_2(%arg0: i32, %arg1: i32) -> (i32, i32) {
    %c0_i32 = arith.constant 0 : i32
    %c0_i32_0 = arith.constant 0 : i32
    %c0_i32_1 = arith.constant 0 : i32
    return %c0_i32, %c0_i32_0 : i32, i32
  }
  func.func @transform_3(%arg0: i32, %arg1: i32) -> (i32, i32) {
    %c0_i32 = arith.constant 0 : i32
    %c0_i32_0 = arith.constant 0 : i32
    %c0_i32_1 = arith.constant 0 : i32
    return %c0_i32, %c0_i32_0 : i32, i32
  }
  func.func @transform_4(%arg0: i32, %arg1: i32) -> (i32, i32) {
    %c0_i32 = arith.constant 0 : i32
    %c0_i32_0 = arith.constant 0 : i32
    %c0_i32_1 = arith.constant 0 : i32
    return %c0_i32, %c0_i32_0 : i32, i32
  }
  func.func @transform_5(%arg0: i32, %arg1: i32) -> (i32, i32, i32) {
    %c0_i32 = arith.constant 0 : i32
    %c0_i32_0 = arith.constant 0 : i32
    return %arg0, %arg1, %c0_i32 : i32, i32, i32
  }
}

module attributes {stable_mosaic.version = 11 : i64} {
  func.func @_ffn_block_kernel(%arg0: i32, %arg1: i32, %arg2: memref<1x3x128xf32, #tpu.memory_space<vmem>>, %arg3: memref<1x128xf32, #tpu.memory_space<vmem>>, %arg4: memref<1x128xf32, #tpu.memory_space<vmem>>, %arg5: memref<128x256xbf16, #tpu.memory_space<vmem>>, %arg6: memref<1x256xf32, #tpu.memory_space<vmem>>, %arg7: memref<256x128xbf16, #tpu.memory_space<vmem>>, %arg8: memref<1x128xf32, #tpu.memory_space<vmem>>, %arg9: memref<1x3x128xf32, #tpu.memory_space<vmem>>) attributes {dimension_semantics = [#tpu.dimension_semantics<parallel>, #tpu.dimension_semantics<parallel>], iteration_bounds = array<i64: 2, 1>, scalar_prefetch = 0 : i64, scratch_operands = 0 : i64, tpu.core_type = #tpu.core_type<tc>, window_params = [{transform_indices = @transform_0, window_bounds = array<i64: 1, 3, 128>}, {pipeline_mode = #tpu.pipeline_mode<synchronous>, transform_indices = @transform_1, window_bounds = array<i64: 1, 128>}, {pipeline_mode = #tpu.pipeline_mode<synchronous>, transform_indices = @transform_2, window_bounds = array<i64: 1, 128>}, {pipeline_mode = #tpu.pipeline_mode<synchronous>, transform_indices = @transform_3, window_bounds = array<i64: 128, 256>}, {pipeline_mode = #tpu.pipeline_mode<synchronous>, transform_indices = @transform_4, window_bounds = array<i64: 1, 256>}, {pipeline_mode = #tpu.pipeline_mode<synchronous>, transform_indices = @transform_5, window_bounds = array<i64: 256, 128>}, {pipeline_mode = #tpu.pipeline_mode<synchronous>, transform_indices = @transform_6, window_bounds = array<i64: 1, 128>}, {transform_indices = @transform_7, window_bounds = array<i64: 1, 3, 128>}]} {
    %c0 = arith.constant 0 : index
    %c0_0 = arith.constant 0 : index
    %c0_1 = arith.constant 0 : index
    %0 = vector.load %arg2[%c0, %c0_0, %c0_1] : memref<1x3x128xf32, #tpu.memory_space<vmem>>, vector<1x3x128xf32>
    %1 = vector.shape_cast %0 : vector<1x3x128xf32> to vector<3x128xf32>
    %c0_2 = arith.constant 0 : index
    %c0_3 = arith.constant 0 : index
    %2 = vector.load %arg3[%c0_2, %c0_3] : memref<1x128xf32, #tpu.memory_space<vmem>>, vector<1x128xf32>
    %c0_4 = arith.constant 0 : index
    %c0_5 = arith.constant 0 : index
    %3 = vector.load %arg4[%c0_4, %c0_5] : memref<1x128xf32, #tpu.memory_space<vmem>>, vector<1x128xf32>
    %cst = arith.constant dense<0.000000e+00> : vector<3xf32>
    %4 = vector.multi_reduction <add>, %1, %cst [1] : vector<3x128xf32> to vector<3xf32>
    %5 = vector.shape_cast %4 : vector<3xf32> to vector<3x1xf32>
    %cst_6 = arith.constant 1.280000e+02 : f32
    %6 = vector.broadcast %cst_6 : f32 to vector<3x1xf32>
    %7 = arith.divf %5, %6 : vector<3x1xf32>
    %8 = vector.broadcast %7 : vector<3x1xf32> to vector<3x128xf32>
    %9 = arith.subf %1, %8 : vector<3x128xf32>
    %10 = arith.mulf %9, %9 : vector<3x128xf32>
    %cst_7 = arith.constant dense<0.000000e+00> : vector<3xf32>
    %11 = vector.multi_reduction <add>, %10, %cst_7 [1] : vector<3x128xf32> to vector<3xf32>
    %12 = vector.shape_cast %11 : vector<3xf32> to vector<3x1xf32>
    %cst_8 = arith.constant 1.280000e+02 : f32
    %13 = vector.broadcast %cst_8 : f32 to vector<3x1xf32>
    %14 = arith.divf %12, %13 : vector<3x1xf32>
    %15 = vector.broadcast %7 : vector<3x1xf32> to vector<3x128xf32>
    %16 = arith.subf %1, %15 : vector<3x128xf32>
    %cst_9 = arith.constant 9.99999996E-13 : f32
    %17 = vector.broadcast %cst_9 : f32 to vector<3x1xf32>
    %18 = arith.addf %14, %17 : vector<3x1xf32>
    %19 = math.rsqrt %18 : vector<3x1xf32>
    %20 = vector.broadcast %19 : vector<3x1xf32> to vector<3x128xf32>
    %21 = arith.mulf %16, %20 : vector<3x128xf32>
    %22 = vector.broadcast %2 : vector<1x128xf32> to vector<3x128xf32>
    %23 = arith.mulf %21, %22 : vector<3x128xf32>
    %24 = vector.broadcast %3 : vector<1x128xf32> to vector<3x128xf32>
    %25 = arith.addf %23, %24 : vector<3x128xf32>
    %26 = arith.truncf %25 : vector<3x128xf32> to vector<3x128xbf16>
    %c0_10 = arith.constant 0 : index
    %c0_11 = arith.constant 0 : index
    %27 = vector.load %arg5[%c0_10, %c0_11] : memref<128x256xbf16, #tpu.memory_space<vmem>>, vector<128x256xbf16>
    %cst_12 = arith.constant dense<0.000000e+00> : vector<3x256xf32>
    %28 = tpu.matmul %26, %27, %cst_12 {dimension_numbers = #tpu.dot_dimension_numbers<[1], [0], [0], [1], [0, 0, 1, 1], [], []>} : vector<3x128xbf16>, vector<128x256xbf16>, vector<3x256xf32> -> vector<3x256xf32>
    %c0_13 = arith.constant 0 : index
    %c0_14 = arith.constant 0 : index
    %29 = vector.load %arg6[%c0_13, %c0_14] : memref<1x256xf32, #tpu.memory_space<vmem>>, vector<1x256xf32>
    %30 = vector.broadcast %29 : vector<1x256xf32> to vector<3x256xf32>
    %31 = arith.addf %28, %30 : vector<3x256xf32>
    %cst_15 = arith.constant 0.000000e+00 : f32
    %32 = vector.broadcast %cst_15 : f32 to vector<3x256xf32>
    %33 = arith.maximumf %31, %32 : vector<3x256xf32>
    %34 = arith.truncf %33 : vector<3x256xf32> to vector<3x256xbf16>
    %c0_16 = arith.constant 0 : index
    %c0_17 = arith.constant 0 : index
    %35 = vector.load %arg7[%c0_16, %c0_17] : memref<256x128xbf16, #tpu.memory_space<vmem>>, vector<256x128xbf16>
    %cst_18 = arith.constant dense<0.000000e+00> : vector<3x128xf32>
    %36 = tpu.matmul %34, %35, %cst_18 {dimension_numbers = #tpu.dot_dimension_numbers<[1], [0], [0], [1], [0, 0, 1, 1], [], []>} : vector<3x256xbf16>, vector<256x128xbf16>, vector<3x128xf32> -> vector<3x128xf32>
    %c0_19 = arith.constant 0 : index
    %c0_20 = arith.constant 0 : index
    %37 = vector.load %arg8[%c0_19, %c0_20] : memref<1x128xf32, #tpu.memory_space<vmem>>, vector<1x128xf32>
    %38 = vector.broadcast %37 : vector<1x128xf32> to vector<3x128xf32>
    %39 = arith.addf %36, %38 : vector<3x128xf32>
    %40 = arith.addf %39, %1 : vector<3x128xf32>
    %c0_21 = arith.constant 0 : index
    %c0_22 = arith.constant 0 : index
    %c0_23 = arith.constant 0 : index
    %41 = vector.load %arg9[%c0_21, %c0_22, %c0_23] : memref<1x3x128xf32, #tpu.memory_space<vmem>>, vector<1x3x128xf32>
    %42 = vector.shape_cast %41 : vector<1x3x128xf32> to vector<3x128xf32>
    %43 = vector.shape_cast %40 : vector<3x128xf32> to vector<1x3x128xf32>
    tpu.vector_store %arg9[%c0_21, %c0_22, %c0_23], %43 {strides = array<i32>} : memref<1x3x128xf32, #tpu.memory_space<vmem>>, vector<1x3x128xf32>,
    return
  }
  func.func @transform_0(%arg0: i32, %arg1: i32) -> (i32, i32, i32) {
    %c0_i32 = arith.constant 0 : i32
    %c0_i32_0 = arith.constant 0 : i32
    return %arg0, %arg1, %c0_i32 : i32, i32, i32
  }
  func.func @transform_1(%arg0: i32, %arg1: i32) -> (i32, i32) {
    %c0_i32 = arith.constant 0 : i32
    %c0_i32_0 = arith.constant 0 : i32
    %c0_i32_1 = arith.constant 0 : i32
    return %c0_i32, %c0_i32_0 : i32, i32
  }
  func.func @transform_2(%arg0: i32, %arg1: i32) -> (i32, i32) {
    %c0_i32 = arith.constant 0 : i32
    %c0_i32_0 = arith.constant 0 : i32
    %c0_i32_1 = arith.constant 0 : i32
    return %c0_i32, %c0_i32_0 : i32, i32
  }
  func.func @transform_3(%arg0: i32, %arg1: i32) -> (i32, i32) {
    %c0_i32 = arith.constant 0 : i32
    %c0_i32_0 = arith.constant 0 : i32
    %c0_i32_1 = arith.constant 0 : i32
    return %c0_i32, %c0_i32_0 : i32, i32
  }
  func.func @transform_4(%arg0: i32, %arg1: i32) -> (i32, i32) {
    %c0_i32 = arith.constant 0 : i32
    %c0_i32_0 = arith.constant 0 : i32
    %c0_i32_1 = arith.constant 0 : i32
    return %c0_i32, %c0_i32_0 : i32, i32
  }
  func.func @transform_5(%arg0: i32, %arg1: i32) -> (i32, i32) {
    %c0_i32 = arith.constant 0 : i32
    %c0_i32_0 = arith.constant 0 : i32
    %c0_i32_1 = arith.constant 0 : i32
    return %c0_i32, %c0_i32_0 : i32, i32
  }
  func.func @transform_6(%arg0: i32, %arg1: i32) -> (i32, i32) {
    %c0_i32 = arith.constant 0 : i32
    %c0_i32_0 = arith.constant 0 : i32
    %c0_i32_1 = arith.constant 0 : i32
    return %c0_i32, %c0_i32_0 : i32, i32
  }
  func.func @transform_7(%arg0: i32, %arg1: i32) -> (i32, i32, i32) {
    %c0_i32 = arith.constant 0 : i32
    %c0_i32_0 = arith.constant 0 : i32
    return %arg0, %arg1, %c0_i32 : i32, i32, i32
  }
}

module attributes {stable_mosaic.version = 11 : i64} {
  func.func @_flash_attn_kernel(%arg0: i32, %arg1: i32, %arg2: i32, %arg3: memref<1x3x128xbf16, #tpu.memory_space<vmem>>, %arg4: memref<1x3x128xbf16, #tpu.memory_space<vmem>>, %arg5: memref<1x3x128xbf16, #tpu.memory_space<vmem>>, %arg6: memref<1x3x128xf32, #tpu.memory_space<vmem>>, %arg7: memref<128x128xbf16, #tpu.memory_space<vmem>>, %arg8: memref<1x128xf32, #tpu.memory_space<vmem>>, %arg9: memref<1x3x128xf32, #tpu.memory_space<vmem>>, %arg10: memref<2x3x1xf32, #tpu.memory_space<vmem>>, %arg11: memref<2x3x1xf32, #tpu.memory_space<vmem>>, %arg12: memref<3x128xf32, #tpu.memory_space<vmem>>) attributes {dimension_semantics = [#tpu.dimension_semantics<parallel>, #tpu.dimension_semantics<parallel>, #tpu.dimension_semantics<arbitrary>], iteration_bounds = array<i64: 2, 1, 1>, scalar_prefetch = 0 : i64, scratch_operands = 3 : i64, tpu.core_type = #tpu.core_type<tc>, window_params = [{transform_indices = @transform_0, window_bounds = array<i64: 1, 3, 128>}, {transform_indices = @transform_1, window_bounds = array<i64: 1, 3, 128>}, {transform_indices = @transform_2, window_bounds = array<i64: 1, 3, 128>}, {transform_indices = @transform_3, window_bounds = array<i64: 1, 3, 128>}, {pipeline_mode = #tpu.pipeline_mode<synchronous>, transform_indices = @transform_4, window_bounds = array<i64: 128, 128>}, {pipeline_mode = #tpu.pipeline_mode<synchronous>, transform_indices = @transform_5, window_bounds = array<i64: 1, 128>}, {transform_indices = @transform_6, window_bounds = array<i64: 1, 3, 128>}]} {
    %c0_i32 = arith.constant 0 : i32
    %0 = arith.cmpi eq, %arg2, %c0_i32 : i32
    %1 = arith.extui %0 : i1 to i32
    %c0_i32_0 = arith.constant 0 : i32
    %2 = arith.cmpi ne, %1, %c0_i32_0 : i32
    scf.if %2 {
      %cst_50 = arith.constant 0xFF800000 : f32
      %82 = vector.broadcast %cst_50 : f32 to vector<2x3x1xf32>
      %c0_51 = arith.constant 0 : index
      %c0_52 = arith.constant 0 : index
      %c0_53 = arith.constant 0 : index
      %83 = vector.load %arg10[%c0_51, %c0_52, %c0_53] : memref<2x3x1xf32, #tpu.memory_space<vmem>>, vector<2x3x1xf32>
      tpu.vector_store %arg10[%c0_51, %c0_52, %c0_53], %82 {strides = array<i32>} : memref<2x3x1xf32, #tpu.memory_space<vmem>>, vector<2x3x1xf32>,
      %cst_54 = arith.constant 0.000000e+00 : f32
      %84 = vector.broadcast %cst_54 : f32 to vector<2x3x1xf32>
      %c0_55 = arith.constant 0 : index
      %c0_56 = arith.constant 0 : index
      %c0_57 = arith.constant 0 : index
      %85 = vector.load %arg11[%c0_55, %c0_56, %c0_57] : memref<2x3x1xf32, #tpu.memory_space<vmem>>, vector<2x3x1xf32>
      tpu.vector_store %arg11[%c0_55, %c0_56, %c0_57], %84 {strides = array<i32>} : memref<2x3x1xf32, #tpu.memory_space<vmem>>, vector<2x3x1xf32>,
      %cst_58 = arith.constant 0.000000e+00 : f32
      %86 = vector.broadcast %cst_58 : f32 to vector<3x128xf32>
      %c0_59 = arith.constant 0 : index
      %c0_60 = arith.constant 0 : index
      %87 = vector.load %arg12[%c0_59, %c0_60] : memref<3x128xf32, #tpu.memory_space<vmem>>, vector<3x128xf32>
      tpu.vector_store %arg12[%c0_59, %c0_60], %86 {strides = array<i32>} : memref<3x128xf32, #tpu.memory_space<vmem>>, vector<3x128xf32>,
    } else {
    }
    %c0 = arith.constant 0 : index
    %c0_1 = arith.constant 0 : index
    %c0_2 = arith.constant 0 : index
    %3 = vector.load %arg3[%c0, %c0_1, %c0_2] : memref<1x3x128xbf16, #tpu.memory_space<vmem>>, vector<1x3x128xbf16>
    %4 = vector.shape_cast %3 : vector<1x3x128xbf16> to vector<3x128xbf16>
    %c0_3 = arith.constant 0 : index
    %c0_4 = arith.constant 0 : index
    %c0_5 = arith.constant 0 : index
    %5 = vector.load %arg4[%c0_3, %c0_4, %c0_5] : memref<1x3x128xbf16, #tpu.memory_space<vmem>>, vector<1x3x128xbf16>
    %6 = vector.shape_cast %5 : vector<1x3x128xbf16> to vector<3x128xbf16>
    %c0_6 = arith.constant 0 : index
    %c0_7 = arith.constant 0 : index
    %c0_8 = arith.constant 0 : index
    %7 = vector.load %arg5[%c0_6, %c0_7, %c0_8] : memref<1x3x128xbf16, #tpu.memory_space<vmem>>, vector<1x3x128xbf16>
    %8 = vector.shape_cast %7 : vector<1x3x128xbf16> to vector<3x128xbf16>
    %9 = vector.extract_strided_slice %4 {offsets = [0, 0], sizes = [3, 64], strides = [1, 1]} : vector<3x128xbf16> to vector<3x64xbf16>
    %10 = vector.extract_strided_slice %6 {offsets = [0, 0], sizes = [3, 64], strides = [1, 1]} : vector<3x128xbf16> to vector<3x64xbf16>
    %cst = arith.constant dense<0.000000e+00> : vector<3x3xf32>
    %11 = tpu.matmul %9, %10, %cst {dimension_numbers = #tpu.dot_dimension_numbers<[1], [1], [0], [0], [0, 0, 1, 0], [], []>} : vector<3x64xbf16>, vector<3x64xbf16>, vector<3x3xf32> -> vector<3x3xf32>
    %cst_9 = arith.constant 1.250000e-01 : f32
    %12 = vector.broadcast %cst_9 : f32 to vector<3x3xf32>
    %13 = arith.mulf %11, %12 : vector<3x3xf32>
    %c0_10 = arith.constant 0 : index
    %c0_11 = arith.constant 0 : index
    %c0_12 = arith.constant 0 : index
    %14 = vector.load %arg10[%c0_10, %c0_11, %c0_12] : memref<2x3x1xf32, #tpu.memory_space<vmem>>, vector<1x3x1xf32>
    %15 = vector.shape_cast %14 : vector<1x3x1xf32> to vector<3x1xf32>
    %cst_13 = arith.constant dense<0xFF800000> : vector<3xf32>
    %16 = vector.multi_reduction <maximumf>, %13, %cst_13 [1] : vector<3x3xf32> to vector<3xf32>
    %17 = vector.shape_cast %16 : vector<3xf32> to vector<3x1xf32>
    %18 = arith.maximumf %15, %17 : vector<3x1xf32>
    %19 = arith.subf %15, %18 : vector<3x1xf32>
    %20 = math.exp %19 : vector<3x1xf32>
    %21 = vector.broadcast %18 : vector<3x1xf32> to vector<3x3xf32>
    %22 = arith.subf %13, %21 : vector<3x3xf32>
    %23 = math.exp %22 : vector<3x3xf32>
    %c0_14 = arith.constant 0 : index
    %c0_15 = arith.constant 0 : index
    %c0_16 = arith.constant 0 : index
    %24 = vector.load %arg11[%c0_14, %c0_15, %c0_16] : memref<2x3x1xf32, #tpu.memory_space<vmem>>, vector<1x3x1xf32>
    %25 = vector.shape_cast %24 : vector<1x3x1xf32> to vector<3x1xf32>
    %26 = arith.mulf %20, %25 : vector<3x1xf32>
    %cst_17 = arith.constant dense<0.000000e+00> : vector<3xf32>
    %27 = vector.multi_reduction <add>, %23, %cst_17 [1] : vector<3x3xf32> to vector<3xf32>
    %28 = vector.shape_cast %27 : vector<3xf32> to vector<3x1xf32>
    %29 = arith.addf %26, %28 : vector<3x1xf32>
    %c0_18 = arith.constant 0 : index
    %c0_19 = arith.constant 0 : index
    %c0_20 = arith.constant 0 : index
    %30 = vector.load %arg11[%c0_18, %c0_19, %c0_20] : memref<2x3x1xf32, #tpu.memory_space<vmem>>, vector<1x3x1xf32>
    %31 = vector.shape_cast %30 : vector<1x3x1xf32> to vector<3x1xf32>
    %32 = vector.shape_cast %29 : vector<3x1xf32> to vector<1x3x1xf32>
    tpu.vector_store %arg11[%c0_18, %c0_19, %c0_20], %32 {strides = array<i32>} : memref<2x3x1xf32, #tpu.memory_space<vmem>>, vector<1x3x1xf32>,
    %c0_21 = arith.constant 0 : index
    %c0_22 = arith.constant 0 : index
    %33 = vector.load %arg12[%c0_21, %c0_22] : memref<3x128xf32, #tpu.memory_space<vmem>>, vector<3x64xf32>
    %34 = vector.broadcast %20 : vector<3x1xf32> to vector<3x64xf32>
    %35 = arith.mulf %34, %33 : vector<3x64xf32>
    %36 = arith.truncf %23 : vector<3x3xf32> to vector<3x3xbf16>
    %37 = vector.extract_strided_slice %8 {offsets = [0, 0], sizes = [3, 64], strides = [1, 1]} : vector<3x128xbf16> to vector<3x64xbf16>
    %cst_23 = arith.constant dense<0.000000e+00> : vector<3x64xf32>
    %38 = tpu.matmul %36, %37, %cst_23 {dimension_numbers = #tpu.dot_dimension_numbers<[1], [0], [0], [1], [0, 0, 1, 1], [], []>} : vector<3x3xbf16>, vector<3x64xbf16>, vector<3x64xf32> -> vector<3x64xf32>
    %39 = arith.addf %35, %38 : vector<3x64xf32>
    %c0_24 = arith.constant 0 : index
    %c0_25 = arith.constant 0 : index
    %40 = vector.load %arg12[%c0_24, %c0_25] : memref<3x128xf32, #tpu.memory_space<vmem>>, vector<3x64xf32>
    tpu.vector_store %arg12[%c0_24, %c0_25], %39 {strides = array<i32>} : memref<3x128xf32, #tpu.memory_space<vmem>>, vector<3x64xf32>,
    %c0_26 = arith.constant 0 : index
    %c0_27 = arith.constant 0 : index
    %c0_28 = arith.constant 0 : index
    %41 = vector.load %arg10[%c0_26, %c0_27, %c0_28] : memref<2x3x1xf32, #tpu.memory_space<vmem>>, vector<1x3x1xf32>
    %42 = vector.shape_cast %41 : vector<1x3x1xf32> to vector<3x1xf32>
    %43 = vector.shape_cast %18 : vector<3x1xf32> to vector<1x3x1xf32>
    tpu.vector_store %arg10[%c0_26, %c0_27, %c0_28], %43 {strides = array<i32>} : memref<2x3x1xf32, #tpu.memory_space<vmem>>, vector<1x3x1xf32>,
    %44 = vector.extract_strided_slice %4 {offsets = [0, 64], sizes = [3, 64], strides = [1, 1]} : vector<3x128xbf16> to vector<3x64xbf16>
    %45 = vector.extract_strided_slice %6 {offsets = [0, 64], sizes = [3, 64], strides = [1, 1]} : vector<3x128xbf16> to vector<3x64xbf16>
    %cst_29 = arith.constant dense<0.000000e+00> : vector<3x3xf32>
    %46 = tpu.matmul %44, %45, %cst_29 {dimension_numbers = #tpu.dot_dimension_numbers<[1], [1], [0], [0], [0, 0, 1, 0], [], []>} : vector<3x64xbf16>, vector<3x64xbf16>, vector<3x3xf32> -> vector<3x3xf32>
    %cst_30 = arith.constant 1.250000e-01 : f32
    %47 = vector.broadcast %cst_30 : f32 to vector<3x3xf32>
    %48 = arith.mulf %46, %47 : vector<3x3xf32>
    %c1 = arith.constant 1 : index
    %c0_31 = arith.constant 0 : index
    %c0_32 = arith.constant 0 : index
    %49 = vector.load %arg10[%c1, %c0_31, %c0_32] : memref<2x3x1xf32, #tpu.memory_space<vmem>>, vector<1x3x1xf32>
    %50 = vector.shape_cast %49 : vector<1x3x1xf32> to vector<3x1xf32>
    %cst_33 = arith.constant dense<0xFF800000> : vector<3xf32>
    %51 = vector.multi_reduction <maximumf>, %48, %cst_33 [1] : vector<3x3xf32> to vector<3xf32>
    %52 = vector.shape_cast %51 : vector<3xf32> to vector<3x1xf32>
    %53 = arith.maximumf %50, %52 : vector<3x1xf32>
    %54 = arith.subf %50, %53 : vector<3x1xf32>
    %55 = math.exp %54 : vector<3x1xf32>
    %56 = vector.broadcast %53 : vector<3x1xf32> to vector<3x3xf32>
    %57 = arith.subf %48, %56 : vector<3x3xf32>
    %58 = math.exp %57 : vector<3x3xf32>
    %c1_34 = arith.constant 1 : index
    %c0_35 = arith.constant 0 : index
    %c0_36 = arith.constant 0 : index
    %59 = vector.load %arg11[%c1_34, %c0_35, %c0_36] : memref<2x3x1xf32, #tpu.memory_space<vmem>>, vector<1x3x1xf32>
    %60 = vector.shape_cast %59 : vector<1x3x1xf32> to vector<3x1xf32>
    %61 = arith.mulf %55, %60 : vector<3x1xf32>
    %cst_37 = arith.constant dense<0.000000e+00> : vector<3xf32>
    %62 = vector.multi_reduction <add>, %58, %cst_37 [1] : vector<3x3xf32> to vector<3xf32>
    %63 = vector.shape_cast %62 : vector<3xf32> to vector<3x1xf32>
    %64 = arith.addf %61, %63 : vector<3x1xf32>
    %c1_38 = arith.constant 1 : index
    %c0_39 = arith.constant 0 : index
    %c0_40 = arith.constant 0 : index
    %65 = vector.load %arg11[%c1_38, %c0_39, %c0_40] : memref<2x3x1xf32, #tpu.memory_space<vmem>>, vector<1x3x1xf32>
    %66 = vector.shape_cast %65 : vector<1x3x1xf32> to vector<3x1xf32>
    %67 = vector.shape_cast %64 : vector<3x1xf32> to vector<1x3x1xf32>
    tpu.vector_store %arg11[%c1_38, %c0_39, %c0_40], %67 {strides = array<i32>} : memref<2x3x1xf32, #tpu.memory_space<vmem>>, vector<1x3x1xf32>,
    %c0_41 = arith.constant 0 : index
    %c64 = arith.constant 64 : index
    %68 = vector.load %arg12[%c0_41, %c64] : memref<3x128xf32, #tpu.memory_space<vmem>>, vector<3x64xf32>
    %69 = vector.broadcast %55 : vector<3x1xf32> to vector<3x64xf32>
    %70 = arith.mulf %69, %68 : vector<3x64xf32>
    %71 = arith.truncf %58 : vector<3x3xf32> to vector<3x3xbf16>
    %72 = vector.extract_strided_slice %8 {offsets = [0, 64], sizes = [3, 64], strides = [1, 1]} : vector<3x128xbf16> to vector<3x64xbf16>
    %cst_42 = arith.constant dense<0.000000e+00> : vector<3x64xf32>
    %73 = tpu.matmul %71, %72, %cst_42 {dimension_numbers = #tpu.dot_dimension_numbers<[1], [0], [0], [1], [0, 0, 1, 1], [], []>} : vector<3x3xbf16>, vector<3x64xbf16>, vector<3x64xf32> -> vector<3x64xf32>
    %74 = arith.addf %70, %73 : vector<3x64xf32>
    %c0_43 = arith.constant 0 : index
    %c64_44 = arith.constant 64 : index
    %75 = vector.load %arg12[%c0_43, %c64_44] : memref<3x128xf32, #tpu.memory_space<vmem>>, vector<3x64xf32>
    tpu.vector_store %arg12[%c0_43, %c64_44], %74 {strides = array<i32>} : memref<3x128xf32, #tpu.memory_space<vmem>>, vector<3x64xf32>,
    %c1_45 = arith.constant 1 : index
    %c0_46 = arith.constant 0 : index
    %c0_47 = arith.constant 0 : index
    %76 = vector.load %arg10[%c1_45, %c0_46, %c0_47] : memref<2x3x1xf32, #tpu.memory_space<vmem>>, vector<1x3x1xf32>
    %77 = vector.shape_cast %76 : vector<1x3x1xf32> to vector<3x1xf32>
    %78 = vector.shape_cast %53 : vector<3x1xf32> to vector<1x3x1xf32>
    tpu.vector_store %arg10[%c1_45, %c0_46, %c0_47], %78 {strides = array<i32>} : memref<2x3x1xf32, #tpu.memory_space<vmem>>, vector<1x3x1xf32>,
    %c0_i32_48 = arith.constant 0 : i32
    %79 = arith.cmpi eq, %arg2, %c0_i32_48 : i32
    %80 = arith.extui %79 : i1 to i32
    %c0_i32_49 = arith.constant 0 : i32
    %81 = arith.cmpi ne, %80, %c0_i32_49 : i32
    scf.if %81 {
      %c0_50 = arith.constant 0 : index
      %c0_51 = arith.constant 0 : index
      %82 = vector.load %arg12[%c0_50, %c0_51] : memref<3x128xf32, #tpu.memory_space<vmem>>, vector<3x64xf32>
      %c0_52 = arith.constant 0 : index
      %c0_53 = arith.constant 0 : index
      %c0_54 = arith.constant 0 : index
      %83 = vector.load %arg11[%c0_52, %c0_53, %c0_54] : memref<2x3x1xf32, #tpu.memory_space<vmem>>, vector<1x3x1xf32>
      %84 = vector.shape_cast %83 : vector<1x3x1xf32> to vector<3x1xf32>
      %85 = tpu.reciprocal %84 {approx = true} : vector<3x1xf32> -> vector<3x1xf32>
      %86 = vector.broadcast %85 : vector<3x1xf32> to vector<3x64xf32>
      %87 = arith.mulf %82, %86 : vector<3x64xf32>
      %c0_55 = arith.constant 0 : index
      %c0_56 = arith.constant 0 : index
      %88 = vector.load %arg12[%c0_55, %c0_56] : memref<3x128xf32, #tpu.memory_space<vmem>>, vector<3x64xf32>
      tpu.vector_store %arg12[%c0_55, %c0_56], %87 {strides = array<i32>} : memref<3x128xf32, #tpu.memory_space<vmem>>, vector<3x64xf32>,
      %c0_57 = arith.constant 0 : index
      %c64_58 = arith.constant 64 : index
      %89 = vector.load %arg12[%c0_57, %c64_58] : memref<3x128xf32, #tpu.memory_space<vmem>>, vector<3x64xf32>
      %c1_59 = arith.constant 1 : index
      %c0_60 = arith.constant 0 : index
      %c0_61 = arith.constant 0 : index
      %90 = vector.load %arg11[%c1_59, %c0_60, %c0_61] : memref<2x3x1xf32, #tpu.memory_space<vmem>>, vector<1x3x1xf32>
      %91 = vector.shape_cast %90 : vector<1x3x1xf32> to vector<3x1xf32>
      %92 = tpu.reciprocal %91 {approx = true} : vector<3x1xf32> -> vector<3x1xf32>
      %93 = vector.broadcast %92 : vector<3x1xf32> to vector<3x64xf32>
      %94 = arith.mulf %89, %93 : vector<3x64xf32>
      %c0_62 = arith.constant 0 : index
      %c64_63 = arith.constant 64 : index
      %95 = vector.load %arg12[%c0_62, %c64_63] : memref<3x128xf32, #tpu.memory_space<vmem>>, vector<3x64xf32>
      tpu.vector_store %arg12[%c0_62, %c64_63], %94 {strides = array<i32>} : memref<3x128xf32, #tpu.memory_space<vmem>>, vector<3x64xf32>,
      %c0_64 = arith.constant 0 : index
      %c0_65 = arith.constant 0 : index
      %96 = vector.load %arg12[%c0_64, %c0_65] : memref<3x128xf32, #tpu.memory_space<vmem>>, vector<3x128xf32>
      %97 = arith.truncf %96 : vector<3x128xf32> to vector<3x128xbf16>
      %c0_66 = arith.constant 0 : index
      %c0_67 = arith.constant 0 : index
      %98 = vector.load %arg7[%c0_66, %c0_67] : memref<128x128xbf16, #tpu.memory_space<vmem>>, vector<128x128xbf16>
      %cst_68 = arith.constant dense<0.000000e+00> : vector<3x128xf32>
      %99 = tpu.matmul %97, %98, %cst_68 {dimension_numbers = #tpu.dot_dimension_numbers<[1], [0], [0], [1], [0, 0, 1, 1], [], []>} : vector<3x128xbf16>, vector<128x128xbf16>, vector<3x128xf32> -> vector<3x128xf32>
      %c0_69 = arith.constant 0 : index
      %c0_70 = arith.constant 0 : index
      %100 = vector.load %arg8[%c0_69, %c0_70] : memref<1x128xf32, #tpu.memory_space<vmem>>, vector<1x128xf32>
      %101 = vector.broadcast %100 : vector<1x128xf32> to vector<3x128xf32>
      %102 = arith.addf %99, %101 : vector<3x128xf32>
      %c0_71 = arith.constant 0 : index
      %c0_72 = arith.constant 0 : index
      %c0_73 = arith.constant 0 : index
      %103 = vector.load %arg6[%c0_71, %c0_72, %c0_73] : memref<1x3x128xf32, #tpu.memory_space<vmem>>, vector<1x3x128xf32>
      %104 = vector.shape_cast %103 : vector<1x3x128xf32> to vector<3x128xf32>
      %105 = arith.addf %102, %104 : vector<3x128xf32>
      %c0_74 = arith.constant 0 : index
      %c0_75 = arith.constant 0 : index
      %c0_76 = arith.constant 0 : index
      %106 = vector.load %arg9[%c0_74, %c0_75, %c0_76] : memref<1x3x128xf32, #tpu.memory_space<vmem>>, vector<1x3x128xf32>
      %107 = vector.shape_cast %106 : vector<1x3x128xf32> to vector<3x128xf32>
      %108 = vector.shape_cast %105 : vector<3x128xf32> to vector<1x3x128xf32>
      tpu.vector_store %arg9[%c0_74, %c0_75, %c0_76], %108 {strides = array<i32>} : memref<1x3x128xf32, #tpu.memory_space<vmem>>, vector<1x3x128xf32>,
    } else {
    }
    return
  }
  func.func @transform_0(%arg0: i32, %arg1: i32, %arg2: i32) -> (i32, i32, i32) {
    %c0_i32 = arith.constant 0 : i32
    %c0_i32_0 = arith.constant 0 : i32
    return %arg0, %arg1, %c0_i32 : i32, i32, i32
  }
  func.func @transform_1(%arg0: i32, %arg1: i32, %arg2: i32) -> (i32, i32, i32) {
    %c1_i32 = arith.constant 1 : i32
    %c0_i32 = arith.constant 0 : i32
    return %arg0, %arg2, %c1_i32 : i32, i32, i32
  }
  func.func @transform_2(%arg0: i32, %arg1: i32, %arg2: i32) -> (i32, i32, i32) {
    %c2_i32 = arith.constant 2 : i32
    %c0_i32 = arith.constant 0 : i32
    return %arg0, %arg2, %c2_i32 : i32, i32, i32
  }
  func.func @transform_3(%arg0: i32, %arg1: i32, %arg2: i32) -> (i32, i32, i32) {
    %c0_i32 = arith.constant 0 : i32
    %c0_i32_0 = arith.constant 0 : i32
    return %arg0, %arg1, %c0_i32 : i32, i32, i32
  }
  func.func @transform_4(%arg0: i32, %arg1: i32, %arg2: i32) -> (i32, i32) {
    %c0_i32 = arith.constant 0 : i32
    %c0_i32_0 = arith.constant 0 : i32
    %c0_i32_1 = arith.constant 0 : i32
    return %c0_i32, %c0_i32_0 : i32, i32
  }
  func.func @transform_5(%arg0: i32, %arg1: i32, %arg2: i32) -> (i32, i32) {
    %c0_i32 = arith.constant 0 : i32
    %c0_i32_0 = arith.constant 0 : i32
    %c0_i32_1 = arith.constant 0 : i32
    return %c0_i32, %c0_i32_0 : i32, i32
  }
  func.func @transform_6(%arg0: i32, %arg1: i32, %arg2: i32) -> (i32, i32, i32) {
    %c0_i32 = arith.constant 0 : i32
    %c0_i32_0 = arith.constant 0 : i32
    return %arg0, %arg1, %c0_i32 : i32, i32, i32
  }
}

module attributes {stable_mosaic.version = 11 : i64} {
  func.func @_ffn_after_norm_kernel(%arg0: i32, %arg1: i32, %arg2: memref<1x3x128xf32, #tpu.memory_space<vmem>>, %arg3: memref<1x128xf32, #tpu.memory_space<vmem>>, %arg4: memref<1x128xf32, #tpu.memory_space<vmem>>, %arg5: memref<128x256xbf16, #tpu.memory_space<vmem>>, %arg6: memref<1x256xf32, #tpu.memory_space<vmem>>, %arg7: memref<256x128xbf16, #tpu.memory_space<vmem>>, %arg8: memref<1x128xf32, #tpu.memory_space<vmem>>, %arg9: memref<1x128xf32, #tpu.memory_space<vmem>>, %arg10: memref<1x128xf32, #tpu.memory_space<vmem>>, %arg11: memref<1x3x128xf32, #tpu.memory_space<vmem>>) attributes {dimension_semantics = [#tpu.dimension_semantics<parallel>, #tpu.dimension_semantics<parallel>], iteration_bounds = array<i64: 2, 1>, scalar_prefetch = 0 : i64, scratch_operands = 0 : i64, tpu.core_type = #tpu.core_type<tc>, window_params = [{transform_indices = @transform_0, window_bounds = array<i64: 1, 3, 128>}, {pipeline_mode = #tpu.pipeline_mode<synchronous>, transform_indices = @transform_1, window_bounds = array<i64: 1, 128>}, {pipeline_mode = #tpu.pipeline_mode<synchronous>, transform_indices = @transform_2, window_bounds = array<i64: 1, 128>}, {pipeline_mode = #tpu.pipeline_mode<synchronous>, transform_indices = @transform_3, window_bounds = array<i64: 128, 256>}, {pipeline_mode = #tpu.pipeline_mode<synchronous>, transform_indices = @transform_4, window_bounds = array<i64: 1, 256>}, {pipeline_mode = #tpu.pipeline_mode<synchronous>, transform_indices = @transform_5, window_bounds = array<i64: 256, 128>}, {pipeline_mode = #tpu.pipeline_mode<synchronous>, transform_indices = @transform_6, window_bounds = array<i64: 1, 128>}, {pipeline_mode = #tpu.pipeline_mode<synchronous>, transform_indices = @transform_7, window_bounds = array<i64: 1, 128>}, {pipeline_mode = #tpu.pipeline_mode<synchronous>, transform_indices = @transform_8, window_bounds = array<i64: 1, 128>}, {transform_indices = @transform_9, window_bounds = array<i64: 1, 3, 128>}]} {
    %c0 = arith.constant 0 : index
    %c0_0 = arith.constant 0 : index
    %c0_1 = arith.constant 0 : index
    %0 = vector.load %arg2[%c0, %c0_0, %c0_1] : memref<1x3x128xf32, #tpu.memory_space<vmem>>, vector<1x3x128xf32>
    %1 = vector.shape_cast %0 : vector<1x3x128xf32> to vector<3x128xf32>
    %c0_2 = arith.constant 0 : index
    %c0_3 = arith.constant 0 : index
    %2 = vector.load %arg3[%c0_2, %c0_3] : memref<1x128xf32, #tpu.memory_space<vmem>>, vector<1x128xf32>
    %c0_4 = arith.constant 0 : index
    %c0_5 = arith.constant 0 : index
    %3 = vector.load %arg4[%c0_4, %c0_5] : memref<1x128xf32, #tpu.memory_space<vmem>>, vector<1x128xf32>
    %cst = arith.constant dense<0.000000e+00> : vector<3xf32>
    %4 = vector.multi_reduction <add>, %1, %cst [1] : vector<3x128xf32> to vector<3xf32>
    %5 = vector.shape_cast %4 : vector<3xf32> to vector<3x1xf32>
    %cst_6 = arith.constant 1.280000e+02 : f32
    %6 = vector.broadcast %cst_6 : f32 to vector<3x1xf32>
    %7 = arith.divf %5, %6 : vector<3x1xf32>
    %8 = vector.broadcast %7 : vector<3x1xf32> to vector<3x128xf32>
    %9 = arith.subf %1, %8 : vector<3x128xf32>
    %10 = arith.mulf %9, %9 : vector<3x128xf32>
    %cst_7 = arith.constant dense<0.000000e+00> : vector<3xf32>
    %11 = vector.multi_reduction <add>, %10, %cst_7 [1] : vector<3x128xf32> to vector<3xf32>
    %12 = vector.shape_cast %11 : vector<3xf32> to vector<3x1xf32>
    %cst_8 = arith.constant 1.280000e+02 : f32
    %13 = vector.broadcast %cst_8 : f32 to vector<3x1xf32>
    %14 = arith.divf %12, %13 : vector<3x1xf32>
    %15 = vector.broadcast %7 : vector<3x1xf32> to vector<3x128xf32>
    %16 = arith.subf %1, %15 : vector<3x128xf32>
    %cst_9 = arith.constant 9.99999996E-13 : f32
    %17 = vector.broadcast %cst_9 : f32 to vector<3x1xf32>
    %18 = arith.addf %14, %17 : vector<3x1xf32>
    %19 = math.rsqrt %18 : vector<3x1xf32>
    %20 = vector.broadcast %19 : vector<3x1xf32> to vector<3x128xf32>
    %21 = arith.mulf %16, %20 : vector<3x128xf32>
    %22 = vector.broadcast %2 : vector<1x128xf32> to vector<3x128xf32>
    %23 = arith.mulf %21, %22 : vector<3x128xf32>
    %24 = vector.broadcast %3 : vector<1x128xf32> to vector<3x128xf32>
    %25 = arith.addf %23, %24 : vector<3x128xf32>
    %26 = arith.truncf %25 : vector<3x128xf32> to vector<3x128xbf16>
    %c0_10 = arith.constant 0 : index
    %c0_11 = arith.constant 0 : index
    %27 = vector.load %arg5[%c0_10, %c0_11] : memref<128x256xbf16, #tpu.memory_space<vmem>>, vector<128x256xbf16>
    %cst_12 = arith.constant dense<0.000000e+00> : vector<3x256xf32>
    %28 = tpu.matmul %26, %27, %cst_12 {dimension_numbers = #tpu.dot_dimension_numbers<[1], [0], [0], [1], [0, 0, 1, 1], [], []>} : vector<3x128xbf16>, vector<128x256xbf16>, vector<3x256xf32> -> vector<3x256xf32>
    %c0_13 = arith.constant 0 : index
    %c0_14 = arith.constant 0 : index
    %29 = vector.load %arg6[%c0_13, %c0_14] : memref<1x256xf32, #tpu.memory_space<vmem>>, vector<1x256xf32>
    %30 = vector.broadcast %29 : vector<1x256xf32> to vector<3x256xf32>
    %31 = arith.addf %28, %30 : vector<3x256xf32>
    %cst_15 = arith.constant 0.000000e+00 : f32
    %32 = vector.broadcast %cst_15 : f32 to vector<3x256xf32>
    %33 = arith.maximumf %31, %32 : vector<3x256xf32>
    %34 = arith.truncf %33 : vector<3x256xf32> to vector<3x256xbf16>
    %c0_16 = arith.constant 0 : index
    %c0_17 = arith.constant 0 : index
    %35 = vector.load %arg7[%c0_16, %c0_17] : memref<256x128xbf16, #tpu.memory_space<vmem>>, vector<256x128xbf16>
    %cst_18 = arith.constant dense<0.000000e+00> : vector<3x128xf32>
    %36 = tpu.matmul %34, %35, %cst_18 {dimension_numbers = #tpu.dot_dimension_numbers<[1], [0], [0], [1], [0, 0, 1, 1], [], []>} : vector<3x256xbf16>, vector<256x128xbf16>, vector<3x128xf32> -> vector<3x128xf32>
    %c0_19 = arith.constant 0 : index
    %c0_20 = arith.constant 0 : index
    %37 = vector.load %arg8[%c0_19, %c0_20] : memref<1x128xf32, #tpu.memory_space<vmem>>, vector<1x128xf32>
    %38 = vector.broadcast %37 : vector<1x128xf32> to vector<3x128xf32>
    %39 = arith.addf %36, %38 : vector<3x128xf32>
    %40 = arith.addf %39, %1 : vector<3x128xf32>
    %c0_21 = arith.constant 0 : index
    %c0_22 = arith.constant 0 : index
    %41 = vector.load %arg9[%c0_21, %c0_22] : memref<1x128xf32, #tpu.memory_space<vmem>>, vector<1x128xf32>
    %c0_23 = arith.constant 0 : index
    %c0_24 = arith.constant 0 : index
    %42 = vector.load %arg10[%c0_23, %c0_24] : memref<1x128xf32, #tpu.memory_space<vmem>>, vector<1x128xf32>
    %cst_25 = arith.constant dense<0.000000e+00> : vector<3xf32>
    %43 = vector.multi_reduction <add>, %40, %cst_25 [1] : vector<3x128xf32> to vector<3xf32>
    %44 = vector.shape_cast %43 : vector<3xf32> to vector<3x1xf32>
    %cst_26 = arith.constant 1.280000e+02 : f32
    %45 = vector.broadcast %cst_26 : f32 to vector<3x1xf32>
    %46 = arith.divf %44, %45 : vector<3x1xf32>
    %47 = vector.broadcast %46 : vector<3x1xf32> to vector<3x128xf32>
    %48 = arith.subf %40, %47 : vector<3x128xf32>
    %49 = arith.mulf %48, %48 : vector<3x128xf32>
    %cst_27 = arith.constant dense<0.000000e+00> : vector<3xf32>
    %50 = vector.multi_reduction <add>, %49, %cst_27 [1] : vector<3x128xf32> to vector<3xf32>
    %51 = vector.shape_cast %50 : vector<3xf32> to vector<3x1xf32>
    %cst_28 = arith.constant 1.280000e+02 : f32
    %52 = vector.broadcast %cst_28 : f32 to vector<3x1xf32>
    %53 = arith.divf %51, %52 : vector<3x1xf32>
    %54 = vector.broadcast %46 : vector<3x1xf32> to vector<3x128xf32>
    %55 = arith.subf %40, %54 : vector<3x128xf32>
    %cst_29 = arith.constant 9.99999996E-13 : f32
    %56 = vector.broadcast %cst_29 : f32 to vector<3x1xf32>
    %57 = arith.addf %53, %56 : vector<3x1xf32>
    %58 = math.rsqrt %57 : vector<3x1xf32>
    %59 = vector.broadcast %58 : vector<3x1xf32> to vector<3x128xf32>
    %60 = arith.mulf %55, %59 : vector<3x128xf32>
    %61 = vector.broadcast %41 : vector<1x128xf32> to vector<3x128xf32>
    %62 = arith.mulf %60, %61 : vector<3x128xf32>
    %63 = vector.broadcast %42 : vector<1x128xf32> to vector<3x128xf32>
    %64 = arith.addf %62, %63 : vector<3x128xf32>
    %c0_30 = arith.constant 0 : index
    %c0_31 = arith.constant 0 : index
    %c0_32 = arith.constant 0 : index
    %65 = vector.load %arg11[%c0_30, %c0_31, %c0_32] : memref<1x3x128xf32, #tpu.memory_space<vmem>>, vector<1x3x128xf32>
    %66 = vector.shape_cast %65 : vector<1x3x128xf32> to vector<3x128xf32>
    %67 = vector.shape_cast %64 : vector<3x128xf32> to vector<1x3x128xf32>
    tpu.vector_store %arg11[%c0_30, %c0_31, %c0_32], %67 {strides = array<i32>} : memref<1x3x128xf32, #tpu.memory_space<vmem>>, vector<1x3x128xf32>,
    return
  }
  func.func @transform_0(%arg0: i32, %arg1: i32) -> (i32, i32, i32) {
    %c0_i32 = arith.constant 0 : i32
    %c0_i32_0 = arith.constant 0 : i32
    return %arg0, %arg1, %c0_i32 : i32, i32, i32
  }
  func.func @transform_1(%arg0: i32, %arg1: i32) -> (i32, i32) {
    %c0_i32 = arith.constant 0 : i32
    %c0_i32_0 = arith.constant 0 : i32
    %c0_i32_1 = arith.constant 0 : i32
    return %c0_i32, %c0_i32_0 : i32, i32
  }
  func.func @transform_2(%arg0: i32, %arg1: i32) -> (i32, i32) {
    %c0_i32 = arith.constant 0 : i32
    %c0_i32_0 = arith.constant 0 : i32
    %c0_i32_1 = arith.constant 0 : i32
    return %c0_i32, %c0_i32_0 : i32, i32
  }
  func.func @transform_3(%arg0: i32, %arg1: i32) -> (i32, i32) {
    %c0_i32 = arith.constant 0 : i32
    %c0_i32_0 = arith.constant 0 : i32
    %c0_i32_1 = arith.constant 0 : i32
    return %c0_i32, %c0_i32_0 : i32, i32
  }
  func.func @transform_4(%arg0: i32, %arg1: i32) -> (i32, i32) {
    %c0_i32 = arith.constant 0 : i32
    %c0_i32_0 = arith.constant 0 : i32
    %c0_i32_1 = arith.constant 0 : i32
    return %c0_i32, %c0_i32_0 : i32, i32
  }
  func.func @transform_5(%arg0: i32, %arg1: i32) -> (i32, i32) {
    %c0_i32 = arith.constant 0 : i32
    %c0_i32_0 = arith.constant 0 : i32
    %c0_i32_1 = arith.constant 0 : i32
    return %c0_i32, %c0_i32_0 : i32, i32
  }
  func.func @transform_6(%arg0: i32, %arg1: i32) -> (i32, i32) {
    %c0_i32 = arith.constant 0 : i32
    %c0_i32_0 = arith.constant 0 : i32
    %c0_i32_1 = arith.constant 0 : i32
    return %c0_i32, %c0_i32_0 : i32, i32
  }
  func.func @transform_7(%arg0: i32, %arg1: i32) -> (i32, i32) {
    %c0_i32 = arith.constant 0 : i32
    %c0_i32_0 = arith.constant 0 : i32
    %c0_i32_1 = arith.constant 0 : i32
    return %c0_i32, %c0_i32_0 : i32, i32
  }
  func.func @transform_8(%arg0: i32, %arg1: i32) -> (i32, i32) {
    %c0_i32 = arith.constant 0 : i32
    %c0_i32_0 = arith.constant 0 : i32
    %c0_i32_1 = arith.constant 0 : i32
    return %c0_i32, %c0_i32_0 : i32, i32
  }
  func.func @transform_9(%arg0: i32, %arg1: i32) -> (i32, i32, i32) {
    %c0_i32 = arith.constant 0 : i32
    %c0_i32_0 = arith.constant 0 : i32
    return %arg0, %arg1, %c0_i32 : i32, i32, i32
  }
}

</mosaic_0001>

<bundles_post_ra>
// kernel: _lambda_.7
= control target key start
LH: loop header
LB: loop body
LE: loop exit
PB: predicated region body
PF: predicated region fallthrough
CT: control target
= control target key end

     0   :  { %s796_s15 = smov 0   ;;  %s798_s16 = smov 0   ;;  %s911_s0 = inlined_call_operand.vmem [shape: bf16[2,3,384], index: 0, kind: input, shape index: {}]   ;;  %s912_s1 = inlined_call_operand.vmem [shape: bf16[384,128], index: 1, kind: input, shape index: {}]   ;;  %s913_s2 = inlined_call_operand.vmem [shape: f32[1,128], index: 2, kind: input, shape index: {}]   ;;  %s914_s3 = inlined_call_operand.vmem [shape: f32[3,128], index: 3, kind: input, shape index: {}]   ;;  %s915_s4 = inlined_call_operand.vmem [shape: f32[2,3,128], index: 4, kind: output, shape index: {}]  }
   0x1   :  { %s800_s17 = smov 0  }
   0x2 LB: > { %s26_s18 = sadd.s32 1, %s765_s16  ;;  %p596_p0 = scmp.ge.s32.totalorder %s769_s17, 1  ;;  %s769_s17 = sphi %s800_s17, %s14_s17   ;;  %s765_s16 = sphi %s798_s16, %s917_s16   ;;  %s761_s15 = sphi %s796_s15, %s916_s15  }
   0x3   : > { %p28_p1 = scmp.ge.s32.totalorder %s26_s18, 2  ;;  %p191_p2 = scmp.lt.s32.totalorder %s769_s17, 3 }
   0x5   : > { %s919_s18 = smov (%p28_p1, %s26_s18), 0  ;;  %p192_p3 = pnand %p596_p0, %p191_p2 }
   0x6   : > { %p227_p4 = scmp.lt.s32.totalorder (!%p192_p3), %s761_s15, 1 }
   0x7   : > { %195 = sbr.rel (%p192_p3) target bundleno = 186 (0xba), region = 36 }
   0xc   : > { %v704_v0 = vld [vmem:[%s912_s1 + $0x38] sm:$0xff]  ;;  %v703_v3 = vld [vmem:[%s912_s1 + $0x30] sm:$0xff]  ;;  %s921_s15 = smov (!%p227_p4, %s761_s15), 1  ;;  %v702_v6 = vld [vmem:[%s912_s1 + $0x28] sm:$0xff] }
   0xd   : > { %v712_v1 = vld [vmem:[%s912_s1 + $0x78] sm:$0xff]  ;;  %452 = vmatpush.bf16.msra.mxu0 %v704_v0  ;;  %v711_v4 = vld [vmem:[%s912_s1 + $0x70] sm:$0xff]  ;;  %s721_s5 = smul.u32 6, %s921_s15  ;;  %v710_v7 = vld [vmem:[%s912_s1 + $0x68] sm:$0xff]  ;;  %s598_s29 = sshll.u32 %s921_s15, 2 }
   0xe   : > { %v720_v2 = vld [vmem:[%s912_s1 + $0xb8] sm:$0xff]  ;;  %465 = vmatpush.bf16.msra.mxu1 %v712_v1  ;;  %v719_v5 = vld [vmem:[%s912_s1 + $0xb0] sm:$0xff]  ;;  %v718_v8 = vld [vmem:[%s912_s1 + $0xa8] sm:$0xff]  ;;  %s246_s8 = scalar_lea.vmem %s915_s4, %s598_s29 }
   0xf   : > { %478 = vmatpush.bf16.msra.mxu2 %v720_v2  ;;  %s235_s12 = scalar_lea.vmem %s911_s0, %s721_s5  ;;  %v701_v10 = vld [vmem:[%s912_s1 + $0x20] sm:$0xff]  ;;  %v700_v13 = vld [vmem:[%s912_s1 + $0x18] sm:$0xff]  ;;  %v699_v16 = vld [vmem:[%s912_s1 + $0x10] sm:$0xff] }
  0x10   : > { %v247_v9 = vld [vmem:[%s235_s12] sm:$0x3f]  ;;  %v708_v14 = vld [vmem:[%s912_s1 + $0x58] sm:$0xff]  ;;  %v707_v17 = vld [vmem:[%s912_s1 + $0x50] sm:$0xff] }
  0x11   : > { %453 = vmatpush.bf16.msra.mxu0 %v703_v3  ;;  %301 = vst [vmem:[#allocation1] ss:$4 sm:$0xff] %v247_v9  ;;  %v709_v11 = vld [vmem:[%s912_s1 + $0x60] sm:$0xff]  ;;  %v716_v15 = vld [vmem:[%s912_s1 + $0x98] sm:$0xff]  ;;  %v715_v18 = vld [vmem:[%s912_s1 + $0x90] sm:$0xff] }
  0x12   : > { %466 = vmatpush.bf16.msra.mxu1 %v711_v4  ;;  %v717_v12 = vld [vmem:[%s912_s1 + $0xa0] sm:$0xff]  ;;  %v698_v19 = vld [vmem:[%s912_s1 + $0x8] sm:$0xff] }
  0x13   : > { %479 = vmatpush.bf16.msra.mxu2 %v719_v5  ;;  %v706_v20 = vld [vmem:[%s912_s1 + $0x48] sm:$0xff]  ;;  %v697_v22 = vld [vmem:[%s912_s1] sm:$0xff] }
  0x14   : > { %v714_v21 = vld [vmem:[%s912_s1 + $0x88] sm:$0xff]  ;;  %v705_v23 = vld [vmem:[%s912_s1 + $0x40] sm:$0xff] }
  0x15   : > { %454 = vmatpush.bf16.msra.mxu0 %v702_v6  ;;  %v713_v24 = vld [vmem:[%s912_s1 + $0x80] sm:$0xff] }
  0x16   : > { %467 = vmatpush.bf16.msra.mxu1 %v710_v7  ;;  %v746_v28 = vld [vmem:[%s913_s2] ss:$0 sm:$0xff] }
  0x17   : > { %480 = vmatpush.bf16.msra.mxu2 %v718_v8  ;;  %v492_v37 = vld [vmem:[%s914_s3] sm:$0x7] }
  0x18   : > { %v302_v25 = vld.sshfl [vmem:[#allocation1] sm:$0xff pattern:$0x73625140]  ;;  %v303_v26 = vld.sshfl [vmem:[#allocation1 + $0x8] sm:$0xff pattern:$0x73625140] }
  0x19   : > { %455 = vmatpush.bf16.msra.mxu0 %v701_v10  ;;  %v304_v27 = vld.sshfl [vmem:[#allocation1 + $0x10] sm:$0xff pattern:$0x73625140] }
  0x1a   : > { %468 = vmatpush.bf16.msra.mxu1 %v709_v11 }
  0x1b   : > { %481 = vmatpush.bf16.msra.mxu2 %v717_v12 }
  0x1d   : > { %456 = vmatpush.bf16.msra.mxu0 %v700_v13 }
  0x1e   : > { %469 = vmatpush.bf16.msra.mxu1 %v708_v14 }
  0x1f   : > { %482 = vmatpush.bf16.msra.mxu2 %v716_v15 }
  0x21   : > { %457 = vmatpush.bf16.msra.mxu0 %v699_v16 }
  0x22   : > { %470 = vmatpush.bf16.msra.mxu1 %v707_v17 }
  0x23   : > { %483 = vmatpush.bf16.msra.mxu2 %v715_v18 }
  0x25   : > { %458 = vmatpush.bf16.msra.mxu0 %v698_v19 }
  0x26   : > { %471 = vmatpush.bf16.msra.mxu1 %v706_v20 }
  0x27   : > { %484 = vmatpush.bf16.msra.mxu2 %v714_v21 }
  0x29   : > { %459 = vmatpush.bf16.msra.mxu0 %v697_v22 }
  0x2a   : > { %472 = vmatpush.bf16.msra.mxu1 %v705_v23 }
  0x2b   : > { %485 = vmatpush.bf16.msra.mxu2 %v713_v24 }
  0x2c   : > { %460 = vmatmul.bf16.vlgmr.msra.gmra.mxu0 %v302_v25 }
  0x2d   : > { %473 = vmatmul.bf16.vlgmr.msra.gmra.mxu1 %v303_v26 }
  0x2e   : > { %486 = vmatmul.bf16.vlgmr.msra.gmra.mxu2 %v304_v27 }
  0xa9   : > { %v461_v29 = vpop.f32.mrf.mxu0 }
  0xaa   : > { %v474_v30 = vpop.f32.mrf.mxu1  ;;  %v462_v31 = vadd.f32 %v746_v28, %v461_v29 }
  0xac   : > { %v475_v32 = vadd.f32 %v474_v30, %v462_v31 }
  0xb1   : > { %v487_v33 = vpop.f32.mrf.mxu2  ;;  %v463_v35 = vpop.f32.mrf.mxu0 }
  0xb2   : > { %v488_v34 = vadd.f32 %v487_v33, %v475_v32  ;;  %v476_v36 = vpop.f32.mrf.mxu1 }
  0xb4   : > { %v491_v38 = vmul.f32 11.313708, %v488_v34 }
  0xb6   : > { %v493_v39 = vadd.f32 %v492_v37, %v491_v38 }
  0xb8   : > { %494 = vst [vmem:[%s246_s8] sm:$0x7] %v493_v39 }
  0xb9   : > { %v489_v40 = vpop.f32.mrf.mxu2 }
  0xba PF: > { %s14_s17 = sadd.s32 1, %s769_s17   ;;  %s916_s15 = smov %s765_s16 }
  0xbb   : > { %p11_p5 = scmp.ge.s32.totalorder %s14_s17, 4   ;;  %s917_s16 = smov %s919_s18 }
  0xbd   :  { %13 = sbr.rel (!%p11_p5) target bundleno = 2 (0x2), region = 69 }

// kernel: _lambda_.8
= control target key start
LH: loop header
LB: loop body
LE: loop exit
PB: predicated region body
PF: predicated region fallthrough
CT: control target
= control target key end

     0   :  { %s838_s18 = smov 0   ;;  %s840_s19 = smov 0   ;;  %s1055_s0 = inlined_call_operand.vmem [shape: f32[2,3,128], index: 0, kind: input, shape index: {}]   ;;  %s1056_s1 = inlined_call_operand.vmem [shape: f32[1,128], index: 1, kind: input, shape index: {}]   ;;  %s1057_s2 = inlined_call_operand.vmem [shape: f32[1,128], index: 2, kind: input, shape index: {}]   ;;  %s1058_s3 = inlined_call_operand.vmem [shape: bf16[128,384], index: 3, kind: input, shape index: {}]   ;;  %s1059_s4 = inlined_call_operand.vmem [shape: f32[1,384], index: 4, kind: input, shape index: {}]   ;;  %s1060_s5 = inlined_call_operand.vmem [shape: bf16[2,3,384], index: 5, kind: output, shape index: {}]  }
   0x1   :  { %s842_s20 = smov 0  }
   0x2 LB: > { %s27_s21 = sadd.s32 1, %s801_s19  ;;  %p626_p0 = scmp.ge.s32.totalorder %s805_s20, 1  ;;  %s805_s20 = sphi %s842_s20, %s15_s20   ;;  %s801_s19 = sphi %s840_s19, %s1066_s19   ;;  %s797_s18 = sphi %s838_s18, %s1065_s18  }
   0x3   : > { %p29_p1 = scmp.ge.s32.totalorder %s27_s21, 2  ;;  %p205_p2 = scmp.lt.s32.totalorder %s805_s20, 3 }
   0x5   : > { %s1068_s21 = smov (%p29_p1, %s27_s21), 0  ;;  %p206_p3 = pnand %p626_p0, %p205_p2 }
   0x6   : > { %p239_p4 = scmp.lt.s32.totalorder (!%p206_p3), %s797_s18, 1 }
   0x7   : > { %209 = sbr.rel (%p206_p3) target bundleno = 429 (0x1ad), region = 40 }
   0xc   : > { %s1070_s18 = smov (!%p239_p4, %s797_s18), 1  ;;  %vm258_vm0 = vcmask 1042432   ;;  %v807_v2 = vmov 128.0   ;;  %v715_v3 = vld [vmem:[%s1058_s3 + $0xa8] sm:$0xf]  ;;  %vm525_vm6 = vcmask 1043458  }
   0xd   : > { %s627_s22 = sshll.u32 %s1070_s18, 2  ;;  %779 = vrcp.f32 %v807_v2  ;;  %v749_v4 = vld [vmem:[%s1058_s3 + $0xb0] sm:$0xf0]  ;;  %v748_v5 = vld [vmem:[%s1058_s3 + $0xac] sm:$0xf]  ;;  %vm511_vm8 = vcmask 1041408  }
   0xe   : > { %s245_s25 = scalar_lea.vmem %s1055_s0, %s627_s22  ;;  %v716_v6 = vor.u32 %v749_v4, %v715_v3  ;;  %v717_v7 = vld [vmem:[%s1058_s3 + $0xb4] sm:$0xf0]  ;;  %v723_v8 = vld [vmem:[%s1058_s3 + $0xb0] sm:$0xf]  ;;  %v750_v9 = vld [vmem:[%s1058_s3 + $0xb8] sm:$0xf0] }
   0xf   : > { %v255_v0 = vld [vmem:[%s245_s25] sm:$0x7]  ;;  %v720_v10 = vor.u32 %v748_v5, %v717_v7  ;;  %v724_v11 = vor.u32 %v750_v9, %v723_v8  ;;  %v703_v23 = vld [vmem:[%s1058_s3 + $0x90] sm:$0xf]  ;;  %v746_v24 = vld [vmem:[%s1058_s3 + $0x98] sm:$0xf0] }
  0x10   : > { %v259_v1 = vsel %vm258_vm0, %v255_v0, 0.0  ;;  %465 = vmatpush.bf16.msra.mxu0 %v716_v6  ;;  %v745_v25 = vld [vmem:[%s1058_s3 + $0x94] sm:$0xf]  ;;  %v704_v26 = vor.u32 %v746_v24, %v703_v23  ;;  %v705_v27 = vld [vmem:[%s1058_s3 + $0x9c] sm:$0xf0]  ;;  %s751_s23 = smul.u32 6, %s1070_s18 }
  0x11   : > { %260 = vadd.xlane.f32.xlu0 %v259_v1  ;;  %478 = vmatpush.bf16.msra.mxu1 %v720_v10  ;;  %v711_v28 = vld [vmem:[%s1058_s3 + $0x98] sm:$0xf]  ;;  %v747_v29 = vld [vmem:[%s1058_s3 + $0xa0] sm:$0xf0]  ;;  %v708_v30 = vor.u32 %v745_v25, %v705_v27  ;;  %v742_v34 = vld [vmem:[%s1058_s3 + $0x7c] sm:$0xf] }
  0x12   : > { %491 = vmatpush.bf16.msra.mxu2 %v724_v11  ;;  %v712_v31 = vor.u32 %v747_v29, %v711_v28  ;;  %v691_v32 = vld [vmem:[%s1058_s3 + $0x78] sm:$0xf]  ;;  %v743_v33 = vld [vmem:[%s1058_s3 + $0x80] sm:$0xf0]  ;;  %v693_v36 = vld [vmem:[%s1058_s3 + $0x84] sm:$0xf0]  ;;  %s254_s18 = scalar_lea.vmem %s1060_s5, %s751_s23 }
  0x13   : > { %v780_v12 = vpop.eup %779  ;;  %v692_v35 = vor.u32 %v743_v33, %v691_v32  ;;  %v699_v37 = vld [vmem:[%s1058_s3 + $0x80] sm:$0xf]  ;;  %v744_v38 = vld [vmem:[%s1058_s3 + $0x88] sm:$0xf0]  ;;  %v696_v39 = vor.u32 %v742_v34, %v693_v36  ;;  %v739_v43 = vld [vmem:[%s1058_s3 + $0x64] sm:$0xf] }
  0x14   : > { %v263_v13 = vmul.f32 128.0, %v780_v12  ;;  %vm267_vm1 = vweird.f32 %v780_v12  ;;  %466 = vmatpush.bf16.msra.mxu0 %v704_v26  ;;  %v700_v40 = vor.u32 %v744_v38, %v699_v37  ;;  %v679_v41 = vld [vmem:[%s1058_s3 + $0x60] sm:$0xf]  ;;  %v740_v42 = vld [vmem:[%s1058_s3 + $0x68] sm:$0xf0]  ;;  %vm515_vm11 = vcmask 1045508  }
  0x15   : > { %479 = vmatpush.bf16.msra.mxu1 %v708_v30  ;;  %v680_v44 = vor.u32 %v740_v42, %v679_v41  ;;  %v681_v45 = vld [vmem:[%s1058_s3 + $0x6c] sm:$0xf0]  ;;  %v687_v46 = vld [vmem:[%s1058_s3 + $0x68] sm:$0xf]  ;;  %v741_v47 = vld [vmem:[%s1058_s3 + $0x70] sm:$0xf0] }
  0x16   : > { %v264_v14 = vsub.f32 1.0, %v263_v13  ;;  %492 = vmatpush.bf16.msra.mxu2 %v712_v31  ;;  %v684_v48 = vor.u32 %v739_v43, %v681_v45  ;;  %v688_v49 = vor.u32 %v741_v47, %v687_v46  ;;  %v667_v50 = vld [vmem:[%s1058_s3 + $0x48] sm:$0xf]  ;;  %v737_v51 = vld [vmem:[%s1058_s3 + $0x50] sm:$0xf0]  ;;  %vm519_vm15 = vcmask 1043456  }
  0x17   : > { %v736_v52 = vld [vmem:[%s1058_s3 + $0x4c] sm:$0xf]  ;;  %v668_v53 = vor.u32 %v737_v51, %v667_v50  ;;  %v669_v54 = vld [vmem:[%s1058_s3 + $0x54] sm:$0xf0]  ;;  %v675_v55 = vld [vmem:[%s1058_s3 + $0x50] sm:$0xf] }
  0x18   : > { %v265_v15 = vmul.f32 %v780_v12, %v264_v14  ;;  %467 = vmatpush.bf16.msra.mxu0 %v692_v35  ;;  %v738_v56 = vld [vmem:[%s1058_s3 + $0x58] sm:$0xf0]  ;;  %v672_v57 = vor.u32 %v736_v52, %v669_v54  ;;  %v655_v59 = vld [vmem:[%s1058_s3 + $0x30] sm:$0xf]  ;;  %v733_v61 = vld [vmem:[%s1058_s3 + $0x34] sm:$0xf] }
  0x19   : > { %480 = vmatpush.bf16.msra.mxu1 %v696_v39  ;;  %v676_v58 = vor.u32 %v738_v56, %v675_v55  ;;  %v734_v60 = vld [vmem:[%s1058_s3 + $0x38] sm:$0xf0]  ;;  %v657_v63 = vld [vmem:[%s1058_s3 + $0x3c] sm:$0xf0]  ;;  %v735_v1 = vld [vmem:[%s1058_s3 + $0x40] sm:$0xf0] }
  0x1a   : > { %v266_v16 = vadd.f32 %v780_v12, %v265_v15  ;;  %493 = vmatpush.bf16.msra.mxu2 %v700_v40  ;;  %v656_v62 = vor.u32 %v734_v60, %v655_v59  ;;  %v660_v2 = vor.u32 %v733_v61, %v657_v63  ;;  %v643_v4 = vld [vmem:[%s1058_s3 + $0x18] sm:$0xf]  ;;  %v731_v5 = vld [vmem:[%s1058_s3 + $0x20] sm:$0xf0]  ;;  %v730_v6 = vld [vmem:[%s1058_s3 + $0x1c] sm:$0xf] }
  0x1b   : > { %v644_v7 = vor.u32 %v731_v5, %v643_v4  ;;  %v645_v8 = vld [vmem:[%s1058_s3 + $0x24] sm:$0xf0]  ;;  %v651_v9 = vld [vmem:[%s1058_s3 + $0x20] sm:$0xf]  ;;  %v732_v10 = vld [vmem:[%s1058_s3 + $0x28] sm:$0xf0] }
  0x1c   : > { %v881_v17 = vsel %vm267_vm1, %v780_v12, %v266_v16  ;;  %468 = vmatpush.bf16.msra.mxu0 %v680_v44  ;;  %v648_v11 = vor.u32 %v730_v6, %v645_v8  ;;  %v652_v12 = vor.u32 %v732_v10, %v651_v9  ;;  %v631_v13 = vld [vmem:[%s1058_s3] sm:$0xf]  ;;  %v728_v14 = vld [vmem:[%s1058_s3 + $0x8] sm:$0xf0]  ;;  %v727_v15 = vld [vmem:[%s1058_s3 + $0x4] sm:$0xf] }
  0x1d   : > { %481 = vmatpush.bf16.msra.mxu1 %v684_v48  ;;  %v632_v16 = vor.u32 %v728_v14, %v631_v13  ;;  %v777_v33 = vld [vmem:[%s1056_s1] ss:$0 sm:$0xff]  ;;  %vm523_vm5 = vsmask.f32 1280  ;;  %vm526_vm7 = vsmask.f32 3328 }
  0x1e   : > { %494 = vmatpush.bf16.msra.mxu2 %v688_v49  ;;  %v329_v39 = vld [vmem:[%s1059_s4] sm:$0x7]  ;;  %vm1027_vm9 = vmand %vm511_vm8, %vm523_vm5  ;;  %vm530_vm12 = vsmask.f32 5376 }
  0x1f   : > { %v331_v40 = vperm.slane %v329_v39, 0  ;;  %v332_v41 = vperm.slane %v329_v39, 1  ;;  %v333_v45 = vperm.slane %v329_v39, 2  ;;  %vm1032_vm10 = vmand %vm525_vm6, %vm526_vm7 }
  0x20   : > { %469 = vmatpush.bf16.msra.mxu0 %v668_v53  ;;  %vm528_vm13 = vmor %vm1032_vm10, %vm1027_vm9 }
  0x21   : > { %482 = vmatpush.bf16.msra.mxu1 %v672_v57  ;;  %vm531_vm14 = vmand %vm515_vm11, %vm530_vm12  ;;  %v533_v57 = vld [vmem:[%s254_s18] sm:$0x3f] }
  0x22   : > { %495 = vmatpush.bf16.msra.mxu2 %v676_v58 }
  0x24   : > { %470 = vmatpush.bf16.msra.mxu0 %v656_v62 }
  0x25   : > { %483 = vmatpush.bf16.msra.mxu1 %v660_v2 }
  0x28   : > { %471 = vmatpush.bf16.msra.mxu0 %v644_v7 }
  0x29   : > { %484 = vmatpush.bf16.msra.mxu1 %v648_v11 }
  0x2c   : > { %472 = vmatpush.bf16.msra.mxu0 %v632_v16 }
  0x84   : > { %v261_v18 = vpop.xlane.xlu0 %260 }
  0x85   : > { %v269_v19 = vmul.f32 %v881_v17, %v261_v18  ;;  %v633_v18 = vld [vmem:[%s1058_s3 + $0xc] sm:$0xf0] }
  0x87   : > { %v884_v20 = vsub.f32 %v255_v0, %v269_v19  ;;  %v663_v0 = vld [vmem:[%s1058_s3 + $0x38] sm:$0xf]  ;;  %v639_v19 = vld [vmem:[%s1058_s3 + $0x8] sm:$0xf] }
  0x88   : > { %v664_v3 = vor.u32 %v735_v1, %v663_v0 }
  0x89   : > { %v271_v21 = vmul.f32 %v884_v20, %v884_v20 }
  0x8a   : > { %496 = vmatpush.bf16.msra.mxu2 %v664_v3 }
  0x8b   : > { %v272_v22 = vsel %vm258_vm0, %v271_v21, 0.0  ;;  %v729_v21 = vld [vmem:[%s1058_s3 + $0x10] sm:$0xf0]  ;;  %vm532_vm0 = vmor %vm531_vm14, %vm528_vm13 }
  0x8c   : > { %273 = vadd.xlane.f32.xlu0 %v272_v22  ;;  %v636_v22 = vor.u32 %v727_v15, %v633_v18  ;;  %v640_v23 = vor.u32 %v729_v21, %v639_v19 }
  0x8e   : > { %497 = vmatpush.bf16.msra.mxu2 %v652_v12  ;;  %485 = vmatpush.bf16.msra.mxu1 %v636_v22 }
  0x92   : > { %498 = vmatpush.bf16.msra.mxu2 %v640_v23 }
  0xff   : > { %v274_v24 = vpop.xlane.xlu0 %273 }
 0x100   : > { %v275_v25 = vmul.f32 %v274_v24, %v881_v17  ;;  %v778_v17 = vld [vmem:[%s1057_s2] ss:$0 sm:$0xff] }
 0x102   : > { %v276_v26 = vadd.f32 1e-12, %v275_v25 }
 0x104   : > { %781 = vrsqrt.f32 %v276_v26  ;;  %vm283_vm3 = vweird.f32 %v276_v26 }
 0x10a   : > { %v782_v27 = vpop.eup %781 }
 0x10b   : > { %v278_v28 = vmul.f32 %v782_v27, %v276_v26  ;;  %vm284_vm2 = vweird.f32 %v782_v27 }
 0x10c   : > { %vm285_vm4 = vmor %vm283_vm3, %vm284_vm2 }
 0x10d   : > { %v279_v29 = vmul.f32 %v782_v27, %v278_v28 }
 0x10f   : > { %v280_v30 = vmul.f32 0.5, %v279_v29 }
 0x111   : > { %v281_v31 = vsub.f32 1.5, %v280_v30 }
 0x113   : > { %v282_v32 = vmul.f32 %v782_v27, %v281_v31 }
 0x115   : > { %v286_v34 = vsel %vm285_vm4, %v782_v27, %v282_v32 }
 0x116   : > { %v287_v35 = vmul.f32 %v286_v34, %v884_v20 }
 0x118   : > { %v291_v36 = vmul.f32 %v777_v33, %v287_v35 }
 0x11a   : > { %v295_v37 = vadd.f32 %v778_v17, %v291_v36 }
 0x11c   : > { %v296_v38 = vpack.c.bf16 %v295_v37, %v295_v37 }
 0x11e   : > { %473 = vmatmul.bf16.vlgmr.msra.gmra.mxu0 %v296_v38  ;;  %486 = vmatmul.bf16.vlgmr.msra.gmra.mxu1 %v296_v38 }
 0x11f   : > { %499 = vmatmul.bf16.vlgmr.msra.gmra.mxu2 %v296_v38 }
 0x19b   : > { %v474_v42 = vpop.f32.mrf.mxu0  ;;  %v487_v43 = vpop.f32.mrf.mxu1 }
 0x19c   : > { %v475_v20 = vadd.f32 %v474_v42, %v331_v40  ;;  %v488_v44 = vadd.f32 %v487_v43, %v332_v41 }
 0x19e   : > { %v504_v47 = vpack.c.bf16 %v488_v44, %v475_v20 }
 0x1a0   : > { %v508_v53 = vrot.slane %v504_v47, 2 }
 0x1a2   : > { %v500_v49 = vpop.f32.mrf.mxu2  ;;  %v514_v58 = vsel %vm511_vm8, %v504_v47, %v508_v53 }
 0x1a3   : > { %v501_v50 = vadd.f32 %v500_v49, %v333_v45  ;;  %v476_v51 = vpop.f32.mrf.mxu0  ;;  %v489_v52 = vpop.f32.mrf.mxu1 }
 0x1a5   : > { %v505_v54 = vpack.c.bf16 %v501_v50, %v501_v50 }
 0x1a7   : > { %v509_v55 = vrot.slane %v505_v54, 4  ;;  %v510_v56 = vrot.slane %v505_v54, 6 }
 0x1a9   : > { %v518_v59 = vsel %vm515_vm11, %v509_v55, %v510_v56 }
 0x1aa   : > { %v520_v60 = vsel %vm519_vm15, %v514_v58, %v518_v59  ;;  %v502_v61 = vpop.f32.mrf.mxu2 }
 0x1ab   : > { %v534_v62 = vsel %vm532_vm0, %v520_v60, %v533_v57 }
 0x1ac   : > { %535 = vst [vmem:[%s254_s18] sm:$0x3f] %v534_v62 }
 0x1ad PF: > { %s15_s20 = sadd.s32 1, %s805_s20   ;;  %s1065_s18 = smov %s801_s19 }
 0x1ae   : > { %p12_p5 = scmp.ge.s32.totalorder %s15_s20, 4   ;;  %s1066_s19 = smov %s1068_s21 }
 0x1b0   :  { %14 = sbr.rel (!%p12_p5) target bundleno = 2 (0x2), region = 70 }

// kernel: _lambda_.10
= control target key start
LH: loop header
LB: loop body
LE: loop exit
PB: predicated region body
PF: predicated region fallthrough
CT: control target
= control target key end

     0   :  { %s979_s24 = smov 0   ;;  %s981_s25 = smov 0   ;;  %s1191_s0 = inlined_call_operand.vmem [shape: f32[2,3,128], index: 0, kind: input, shape index: {}]   ;;  %s1192_s1 = inlined_call_operand.vmem [shape: f32[1,128], index: 1, kind: input, shape index: {}]   ;;  %s1193_s2 = inlined_call_operand.vmem [shape: f32[1,128], index: 2, kind: input, shape index: {}]   ;;  %s1194_s3 = inlined_call_operand.vmem [shape: bf16[128,256], index: 3, kind: input, shape index: {}]   ;;  %s1195_s4 = inlined_call_operand.vmem [shape: f32[1,256], index: 4, kind: input, shape index: {}]   ;;  %s1196_s5 = inlined_call_operand.vmem [shape: bf16[256,128], index: 5, kind: input, shape index: {}]   ;;  %s1197_s6 = inlined_call_operand.vmem [shape: f32[1,128], index: 6, kind: input, shape index: {}]   ;;  %s1198_s7 = inlined_call_operand.vmem [shape: f32[2,3,128], index: 7, kind: output, shape index: {}]  }
   0x1   :  { %s983_s26 = smov 0  }
   0x2 LB: > { %s29_s27 = sadd.s32 1, %s932_s25  ;;  %p717_p0 = scmp.ge.s32.totalorder %s936_s26, 1  ;;  %s936_s26 = sphi %s983_s26, %s17_s26   ;;  %s932_s25 = sphi %s981_s25, %s1200_s25   ;;  %s928_s24 = sphi %s979_s24, %s1199_s24  }
   0x3   : > { %p31_p1 = scmp.ge.s32.totalorder %s29_s27, 2  ;;  %p255_p2 = scmp.lt.s32.totalorder %s936_s26, 3 }
   0x5   : > { %s1202_s27 = smov (%p31_p1, %s29_s27), 0  ;;  %p256_p3 = pnand %p717_p0, %p255_p2 }
   0x6   : > { %p291_p4 = scmp.lt.s32.totalorder (!%p256_p3), %s928_s24, 1 }
   0x7   : > { %259 = sbr.rel (%p256_p3) target bundleno = 558 (0x22e), region = 48 }
   0xc   : > { %s1204_s24 = smov (!%p291_p4, %s928_s24), 1  ;;  %vm308_vm0 = vcmask 1042432   ;;  %v938_v2 = vmov 128.0   ;;  %v778_v3 = vld [vmem:[%s1194_s3 + $0x70] sm:$0xf]  ;;  %v873_v62 = vld [vmem:[%s1196_s5 + $0x38] sm:$0xff] }
   0xd   : > { %s718_s28 = sshll.u32 %s1204_s24, 2  ;;  %910 = vrcp.f32 %v938_v2  ;;  %v865_v4 = vld [vmem:[%s1194_s3 + $0x74] sm:$0xf0]  ;;  %v864_v5 = vld [vmem:[%s1194_s3 + $0x74] sm:$0xf]  ;;  %611 = vmatpush.bf16.msra.mxu2 %v873_v62 }
   0xe   : > { %s297_s8 = scalar_lea.vmem %s1191_s0, %s718_s28  ;;  %v779_v6 = vor.u32 %v865_v4, %v778_v3  ;;  %v780_v7 = vld [vmem:[%s1194_s3 + $0x78] sm:$0xf0]  ;;  %v770_v20 = vld [vmem:[%s1194_s3 + $0x60] sm:$0xf]  ;;  %v863_v21 = vld [vmem:[%s1194_s3 + $0x64] sm:$0xf0]  ;;  %s304_s30 = scalar_lea.vmem %s1198_s7, %s718_s28 }
   0xf   : > { %v1005_v0 = vld [vmem:[%s297_s8] sm:$0x7]  ;;  %v783_v8 = vor.u32 %v864_v5, %v780_v7  ;;  %v862_v22 = vld [vmem:[%s1194_s3 + $0x64] sm:$0xf]  ;;  %v771_v23 = vor.u32 %v863_v21, %v770_v20  ;;  %v772_v24 = vld [vmem:[%s1194_s3 + $0x68] sm:$0xf0] }
  0x10   : > { %v309_v1 = vsel %vm308_vm0, %v1005_v0, 0.0  ;;  %449 = vmatpush.bf16.msra.mxu0 %v779_v6  ;;  %v775_v25 = vor.u32 %v862_v22, %v772_v24  ;;  %v762_v26 = vld [vmem:[%s1194_s3 + $0x50] sm:$0xf]  ;;  %v861_v27 = vld [vmem:[%s1194_s3 + $0x54] sm:$0xf0]  ;;  %v871_v6 = vld [vmem:[%s1196_s5 + $0x28] sm:$0xff] }
  0x11   : > { %310 = vadd.xlane.f32.xlu0 %v309_v1  ;;  %462 = vmatpush.bf16.msra.mxu1 %v783_v8  ;;  %v860_v28 = vld [vmem:[%s1194_s3 + $0x54] sm:$0xf]  ;;  %v763_v29 = vor.u32 %v861_v27, %v762_v26  ;;  %v764_v30 = vld [vmem:[%s1194_s3 + $0x58] sm:$0xf0]  ;;  %v754_v32 = vld [vmem:[%s1194_s3 + $0x40] sm:$0xf] }
  0x12   : > { %v767_v31 = vor.u32 %v860_v28, %v764_v30  ;;  %v859_v33 = vld [vmem:[%s1194_s3 + $0x44] sm:$0xf0]  ;;  %v858_v34 = vld [vmem:[%s1194_s3 + $0x44] sm:$0xf]  ;;  %v756_v36 = vld [vmem:[%s1194_s3 + $0x48] sm:$0xf0] }
  0x13   : > { %v911_v9 = vpop.eup %910  ;;  %v755_v35 = vor.u32 %v859_v33, %v754_v32  ;;  %v759_v37 = vor.u32 %v858_v34, %v756_v36  ;;  %v746_v38 = vld [vmem:[%s1194_s3 + $0x30] sm:$0xf]  ;;  %v857_v39 = vld [vmem:[%s1194_s3 + $0x34] sm:$0xf0]  ;;  %v856_v40 = vld [vmem:[%s1194_s3 + $0x34] sm:$0xf] }
  0x14   : > { %v313_v10 = vmul.f32 128.0, %v911_v9  ;;  %vm317_vm1 = vweird.f32 %v911_v9  ;;  %450 = vmatpush.bf16.msra.mxu0 %v771_v23  ;;  %v747_v41 = vor.u32 %v857_v39, %v746_v38  ;;  %v748_v42 = vld [vmem:[%s1194_s3 + $0x38] sm:$0xf0]  ;;  %v738_v44 = vld [vmem:[%s1194_s3 + $0x20] sm:$0xf]  ;;  %v872_v3 = vld [vmem:[%s1196_s5 + $0x30] sm:$0xff] }
  0x15   : > { %463 = vmatpush.bf16.msra.mxu1 %v775_v25  ;;  %v751_v43 = vor.u32 %v856_v40, %v748_v42  ;;  %v855_v45 = vld [vmem:[%s1194_s3 + $0x24] sm:$0xf0]  ;;  %v854_v46 = vld [vmem:[%s1194_s3 + $0x24] sm:$0xf]  ;;  %v740_v48 = vld [vmem:[%s1194_s3 + $0x28] sm:$0xf0]  ;;  %612 = vmatpush.bf16.msra.mxu2 %v872_v3 }
  0x16   : > { %v314_v11 = vsub.f32 1.0, %v313_v10  ;;  %v739_v47 = vor.u32 %v855_v45, %v738_v44  ;;  %v743_v49 = vor.u32 %v854_v46, %v740_v48  ;;  %v730_v50 = vld [vmem:[%s1194_s3 + $0x10] sm:$0xf]  ;;  %v853_v51 = vld [vmem:[%s1194_s3 + $0x14] sm:$0xf0]  ;;  %v879_v7 = vld [vmem:[%s1196_s5 + $0x68] sm:$0xff] }
  0x17   : > { %v852_v52 = vld [vmem:[%s1194_s3 + $0x14] sm:$0xf]  ;;  %v731_v53 = vor.u32 %v853_v51, %v730_v50  ;;  %v732_v54 = vld [vmem:[%s1194_s3 + $0x18] sm:$0xf0]  ;;  %v722_v55 = vld [vmem:[%s1194_s3] sm:$0xf] }
  0x18   : > { %v315_v12 = vmul.f32 %v911_v9, %v314_v11  ;;  %451 = vmatpush.bf16.msra.mxu0 %v763_v29  ;;  %v851_v56 = vld [vmem:[%s1194_s3 + $0x4] sm:$0xf0]  ;;  %v735_v57 = vor.u32 %v852_v52, %v732_v54  ;;  %v850_v58 = vld [vmem:[%s1194_s3 + $0x4] sm:$0xf]  ;;  %v724_v59 = vld [vmem:[%s1194_s3 + $0x8] sm:$0xf0] }
  0x19   : > { %464 = vmatpush.bf16.msra.mxu1 %v767_v31  ;;  %v723_v60 = vor.u32 %v851_v56, %v722_v55  ;;  %v727_v61 = vor.u32 %v850_v58, %v724_v59  ;;  %v881_v63 = vld [vmem:[%s1196_s5 + $0x78] sm:$0xff]  ;;  %v880_v4 = vld [vmem:[%s1196_s5 + $0x70] sm:$0xff]  ;;  %613 = vmatpush.bf16.msra.mxu2 %v871_v6  ;;  %v870_v8 = vld [vmem:[%s1196_s5 + $0x20] sm:$0xff] }
  0x1a   : > { %v316_v13 = vadd.f32 %v911_v9, %v315_v12  ;;  %624 = vmatpush.bf16.msra.mxu3 %v881_v63  ;;  %v869_v12 = vld [vmem:[%s1196_s5 + $0x18] sm:$0xff]  ;;  %v907_v21 = vld [vmem:[%s1192_s1] ss:$0 sm:$0xff]  ;;  %v867_v28 = vld [vmem:[%s1196_s5 + $0x8] sm:$0xff] }
  0x1b   : > { %v908_v24 = vld [vmem:[%s1193_s2] ss:$0 sm:$0xff]  ;;  %v875_v29 = vld [vmem:[%s1196_s5 + $0x48] sm:$0xff] }
  0x1c   : > { %v1021_v14 = vsel %vm317_vm1, %v911_v9, %v316_v13  ;;  %452 = vmatpush.bf16.msra.mxu0 %v755_v35  ;;  %v878_v9 = vld [vmem:[%s1196_s5 + $0x60] sm:$0xff]  ;;  %v877_v13 = vld [vmem:[%s1196_s5 + $0x58] sm:$0xff] }
  0x1d   : > { %465 = vmatpush.bf16.msra.mxu1 %v759_v37  ;;  %614 = vmatpush.bf16.msra.mxu2 %v870_v8  ;;  %v874_v30 = vld [vmem:[%s1196_s5 + $0x40] sm:$0xff] }
  0x1e   : > { %625 = vmatpush.bf16.msra.mxu3 %v880_v4  ;;  %v363_v31 = vld [vmem:[%s1195_s4] sm:$0x3] }
  0x1f   : > { %v365_v32 = vperm.slane %v363_v31, 0  ;;  %v366_v33 = vperm.slane %v363_v31, 1  ;;  %v909_v44 = vld [vmem:[%s1197_s6] ss:$0 sm:$0xff] }
  0x20   : > { %453 = vmatpush.bf16.msra.mxu0 %v747_v41 }
  0x21   : > { %466 = vmatpush.bf16.msra.mxu1 %v751_v43  ;;  %615 = vmatpush.bf16.msra.mxu2 %v869_v12 }
  0x22   : > { %626 = vmatpush.bf16.msra.mxu3 %v879_v7 }
  0x24   : > { %454 = vmatpush.bf16.msra.mxu0 %v739_v47 }
  0x25   : > { %467 = vmatpush.bf16.msra.mxu1 %v743_v49 }
  0x26   : > { %627 = vmatpush.bf16.msra.mxu3 %v878_v9 }
  0x28   : > { %455 = vmatpush.bf16.msra.mxu0 %v731_v53 }
  0x29   : > { %468 = vmatpush.bf16.msra.mxu1 %v735_v57 }
  0x2a   : > { %628 = vmatpush.bf16.msra.mxu3 %v877_v13 }
  0x2c   : > { %456 = vmatpush.bf16.msra.mxu0 %v723_v60 }
  0x2d   : > { %469 = vmatpush.bf16.msra.mxu1 %v727_v61 }
  0x84   : > { %v311_v15 = vpop.xlane.xlu0 %310 }
  0x85   : > { %v319_v16 = vmul.f32 %v1021_v14, %v311_v15 }
  0x87   : > { %v1025_v17 = vsub.f32 %v1005_v0, %v319_v16  ;;  %v868_v16 = vld [vmem:[%s1196_s5 + $0x10] sm:$0xff] }
  0x88   : > { %616 = vmatpush.bf16.msra.mxu2 %v868_v16 }
  0x89   : > { %v321_v18 = vmul.f32 %v1025_v17, %v1025_v17 }
  0x8b   : > { %v322_v19 = vsel %vm308_vm0, %v321_v18, 0.0  ;;  %v876_v18 = vld [vmem:[%s1196_s5 + $0x50] sm:$0xff] }
  0x8c   : > { %323 = vadd.xlane.f32.xlu0 %v322_v19  ;;  %629 = vmatpush.bf16.msra.mxu3 %v876_v18 }
  0x8d   : > { %617 = vmatpush.bf16.msra.mxu2 %v867_v28 }
  0x90   : > { %630 = vmatpush.bf16.msra.mxu3 %v875_v29 }
  0x94   : > { %631 = vmatpush.bf16.msra.mxu3 %v874_v30 }
  0xff   : > { %v324_v1 = vpop.xlane.xlu0 %323 }
 0x100   : > { %v325_v2 = vmul.f32 %v324_v1, %v1021_v14 }
 0x102   : > { %v326_v5 = vadd.f32 1e-12, %v325_v2 }
 0x104   : > { %912 = vrsqrt.f32 %v326_v5  ;;  %vm333_vm3 = vweird.f32 %v326_v5 }
 0x10a   : > { %v913_v10 = vpop.eup %912 }
 0x10b   : > { %v328_v11 = vmul.f32 %v913_v10, %v326_v5  ;;  %vm334_vm2 = vweird.f32 %v913_v10 }
 0x10c   : > { %vm335_vm4 = vmor %vm333_vm3, %vm334_vm2 }
 0x10d   : > { %v329_v14 = vmul.f32 %v913_v10, %v328_v11 }
 0x10f   : > { %v330_v15 = vmul.f32 0.5, %v329_v14 }
 0x111   : > { %v331_v19 = vsub.f32 1.5, %v330_v15 }
 0x113   : > { %v332_v20 = vmul.f32 %v913_v10, %v331_v19 }
 0x115   : > { %v336_v22 = vsel %vm335_vm4, %v913_v10, %v332_v20 }
 0x116   : > { %v337_v23 = vmul.f32 %v336_v22, %v1025_v17  ;;  %v866_v17 = vld [vmem:[%s1196_s5] sm:$0xff] }
 0x117   : > { %618 = vmatpush.bf16.msra.mxu2 %v866_v17 }
 0x118   : > { %v341_v25 = vmul.f32 %v907_v21, %v337_v23 }
 0x11a   : > { %v345_v26 = vadd.f32 %v908_v24, %v341_v25 }
 0x11c   : > { %v346_v27 = vpack.c.bf16 %v345_v26, %v345_v26 }
 0x11e   : > { %457 = vmatmul.bf16.vlgmr.msra.gmra.mxu0 %v346_v27  ;;  %470 = vmatmul.bf16.vlgmr.msra.gmra.mxu1 %v346_v27 }
 0x19b   : > { %v458_v34 = vpop.f32.mrf.mxu0  ;;  %v471_v35 = vpop.f32.mrf.mxu1 }
 0x19c   : > { %v459_v36 = vadd.f32 %v458_v34, %v365_v32  ;;  %v472_v37 = vadd.f32 %v471_v35, %v366_v33 }
 0x19e   : > { %v475_v38 = vmax.f32 %v459_v36, 0.0  ;;  %v476_v39 = vmax.f32 %v472_v37, 0.0 }
 0x1a0   : > { %v477_v40 = vpack.c.bf16 %v475_v38, %v475_v38  ;;  %v478_v41 = vpack.c.bf16 %v476_v39, %v476_v39 }
 0x1a2   : > { %619 = vmatmul.bf16.vlgmr.msra.gmra.mxu2 %v477_v40  ;;  %632 = vmatmul.bf16.vlgmr.msra.gmra.mxu3 %v478_v41 }
 0x1a3   : > { %v460_v42 = vpop.f32.mrf.mxu0  ;;  %v473_v43 = vpop.f32.mrf.mxu1 }
 0x225   : > { %v620_v45 = vpop.f32.mrf.mxu2  ;;  %v633_v46 = vpop.f32.mrf.mxu3 }
 0x226   : > { %v621_v47 = vadd.f32 %v909_v44, %v620_v45 }
 0x228   : > { %v634_v48 = vadd.f32 %v633_v46, %v621_v47 }
 0x22a   : > { %v637_v49 = vadd.f32 %v634_v48, %v1005_v0 }
 0x22c   : > { %638 = vst [vmem:[%s304_s30] sm:$0x7] %v637_v49 }
 0x22d   : > { %v622_v50 = vpop.f32.mrf.mxu2  ;;  %v635_v51 = vpop.f32.mrf.mxu3 }
 0x22e PF: > { %s17_s26 = sadd.s32 1, %s936_s26   ;;  %s1199_s24 = smov %s932_s25 }
 0x22f   : > { %p14_p5 = scmp.ge.s32.totalorder %s17_s26, 4   ;;  %s1200_s25 = smov %s1202_s27 }
 0x231   :  { %16 = sbr.rel (!%p14_p5) target bundleno = 2 (0x2), region = 78 }

// kernel: _lambda_.9
= control target key start
LH: loop header
LB: loop body
LE: loop exit
PB: predicated region body
PF: predicated region fallthrough
CT: control target
= control target key end

     0   :  { %s1007_s21 = smov 0   ;;  %s1009_s22 = smov 0   ;;  %s1109_s0 = inlined_call_operand.vmem [shape: bf16[2,3,384], index: 0, kind: input, shape index: {}, may-alias: {0,1,2}]   ;;  %s1110_s1 = inlined_call_operand.vmem [shape: bf16[2,3,384], index: 1, kind: input, shape index: {}, may-alias: {0,1,2}]   ;;  %s1111_s2 = inlined_call_operand.vmem [shape: bf16[2,3,384], index: 2, kind: input, shape index: {}, may-alias: {0,1,2}]   ;;  %s1112_s3 = inlined_call_operand.vmem [shape: f32[2,3,128], index: 3, kind: input, shape index: {}]   ;;  %s1113_s4 = inlined_call_operand.vmem [shape: bf16[128,128], index: 4, kind: input, shape index: {}]   ;;  %s1114_s5 = inlined_call_operand.vmem [shape: f32[1,128], index: 5, kind: input, shape index: {}]   ;;  %s1115_s6 = inlined_call_operand.vmem [shape: f32[2,3,128], index: 6, kind: output, shape index: {}]  }
   0x1   :  { %s1011_s23 = smov 0  }
   0x2 LB: > { %s35_s24 = sadd.s32 1, %s961_s22  ;;  %p843_p0 = scmp.ge.s32.totalorder %s965_s23, 1  ;;  %s965_s23 = sphi %s1011_s23, %s16_s23   ;;  %s961_s22 = sphi %s1009_s22, %s1117_s22   ;;  %s957_s21 = sphi %s1007_s21, %s1116_s21  }
   0x3   : > { %p37_p1 = scmp.ge.s32.totalorder %s35_s24, 2  ;;  %p287_p2 = scmp.lt.s32.totalorder %s965_s23, 3 }
   0x5   : > { %s1119_s24 = smov (%p37_p1, %s35_s24), 0  ;;  %p288_p3 = pnand %p843_p0, %p287_p2 }
   0x6   : > { %p350_p4 = scmp.lt.s32.totalorder (!%p288_p3), %s957_s21, 1  ;;  %s967_s8 = smov (!%p288_p3), 64  }
   0x7   : > { %291 = sbr.rel (%p288_p3) target bundleno = 926 (0x39e), region = 44 }
   0xc   : > { %s1121_s21 = smov (!%p350_p4, %s957_s21), 1  ;;  %vm407_vm0 = vcmask 523264   ;;  %vm398_vm1 = vcmask 2048   ;;  %v968_v5 = vmov -inf   ;;  %vm429_vm2 = vcmask 18432  }
   0xd   : > { %s1028_s25 = smul.u32 6, %s1121_s21  ;;  %399 = vst.msk [vmem:[#allocation2] sm:$0x7] %vm398_vm1, %v968_v5  ;;  %v969_v13 = vmov 0   ;;  %vm465_vm3 = vcmask 1040384   ;;  %vm466_vm4 = vcmask 1041408  }
   0xe   : > { %400 = vst.msk [vmem:[#allocation2 + $0x4] sm:$0x7] %vm398_vm1, %v968_v5  ;;  %927 = vset.pattern.permute.xlu2 %v969_v13  ;;  %928 = vset.pattern.permute.xlu0 %v969_v13  ;;  %v970_v23 = vmov 65535   ;;  %v971_v32 = vmov 0.0   ;;  %vm461_vm5 = vcmask 23552   ;;  %vm486_vm6 = vcmask 518144  }
   0xf   : > { %s770_s28 = scalar_lea.vmem %s1110_s1, %s1028_s25  ;;  %s358_s7 = scalar_lea.vmem %s1109_s0, %s1028_s25  ;;  %929 = vset.pattern.permute.xlu1 %v969_v13  ;;  %v467_v24 = vsel %vm465_vm3, 4294967295, %v970_v23  ;;  %401 = vst.msk [vmem:[#allocation3] sm:$0x7] %vm398_vm1, %v971_v32  ;;  %v890_v13 = vld [vmem:[%s1113_s4 + $0x8] sm:$0xff]  ;;  %vm581_vm7 = vcmask 1042944  }
  0x10   : > { %v849_v0 = vld [vmem:[%s770_s28 + $0x2] sm:$0x3]  ;;  %v404_v1 = vld [vmem:[%s358_s7] sm:$0x3]  ;;  %s776_s11 = scalar_lea.vmem %s1111_s2, %s1028_s25  ;;  %v468_v25 = vsel %vm466_vm4, %v467_v24, 0 }
  0x11   : > { %v412_v2 = vsel %vm407_vm0, %v849_v0, 0  ;;  %489 = vst [vmem:[#allocation1] ss:$4 sm:$0xff] %v404_v1  ;;  %v850_v22 = vld [vmem:[%s776_s11 + $0x4] sm:$0x3] }
  0x12   : > { %421 = vmatpush.bf16.xpose.msra.mxu0 %v412_v2  ;;  %v470_v26 = vand.u32 %v850_v22, %v468_v25  ;;  %403 = vst [vmem:[#allocation4] sm:$0x7] %v971_v32 }
  0x13   : > { %402 = vst.msk [vmem:[#allocation3 + $0x4] sm:$0x7] %vm398_vm1, %v971_v32 }
  0x14   : > { %v428_v14 = vld [vmem:[#allocation2] sm:$0x7]  ;;  %479 = vmatpush.bf16.msra.mxu3 %v470_v26 }
  0x15   : > { %v520_v37 = vld [vmem:[#allocation2 + $0x4] sm:$0x7] }
  0x16   : > { %v445_v45 = vld [vmem:[#allocation3] sm:$0x7] }
  0x18   : > { %v490_v3 = vld.sshfl [vmem:[#allocation1] sm:$0xff pattern:$0x73625140] }
  0x19   : > { %851 = vmatmul.msk.bf16.vlgmr.msra.gmra.mxu0 %vm407_vm0, %v404_v1  ;;  %494 = vst [vmem:[#allocation1] ss:$4 sm:$0xff] %v849_v0  ;;  %v453_v51 = vld [vmem:[#allocation4] sm:$0x7] }
  0x1a   : > { %v537_v61 = vld [vmem:[#allocation3 + $0x4] sm:$0x7] }
  0x20   : > { %v495_v4 = vld.sshfl [vmem:[#allocation1] sm:$0xff pattern:$0x73625140] }
  0x21   : > { %497 = vrot.lane.b32.xlu0 %v495_v4, %s967_s8  ;;  %552 = vst [vmem:[#allocation1] ss:$4 sm:$0xff] %v850_v22 }
  0x28   : > { %v553_v28 = vld.sshfl [vmem:[#allocation1] sm:$0xff pattern:$0x73625140] }
  0x29   : > { %492 = vrot.lane.b32.xlu0 %v490_v3, %s967_s8 }
  0x31   : > { %555 = vrot.lane.b32.xlu0 %v553_v28, %s967_s8  ;;  %v930_v28 = vld [vmem:[%s1114_s5] ss:$0 sm:$0xff] }
  0x93   : > { %v498_v6 = vpop.permute.xlu0 %497 }
  0x94   : > { %v503_v7 = vsel %vm407_vm0, %v498_v6, 0 }
  0x95   : > { %512 = vmatpush.bf16.xpose.msra.mxu2 %v503_v7  ;;  %v896_v7 = vld [vmem:[%s1113_s4 + $0x38] sm:$0xff] }
  0x96   : > { %v423_v8 = vpop.f32.mrf.mxu0  ;;  %677 = vmatpush.bf16.msra.mxu1 %v896_v7 }
  0x97   : > { %v427_v9 = vmul.f32 0.125, %v423_v8  ;;  %v895_v8 = vld [vmem:[%s1113_s4 + $0x30] sm:$0xff] }
  0x99   : > { %v430_v10 = vsel %vm429_vm2, %v427_v9, -inf }
  0x9a   : > { %431 = vmax.xlane.f32.xlu1 %v430_v10  ;;  %678 = vmatpush.bf16.msra.mxu1 %v895_v8  ;;  %v893_v10 = vld [vmem:[%s1113_s4 + $0x20] sm:$0xff] }
  0x9b   : > { %v493_v11 = vpop.permute.xlu0 %492 }
  0x9c   : > { %853 = vmatmul.msk.bf16.vlgmr.msra.gmra.mxu2 %vm407_vm0, %v493_v11  ;;  %v892_v11 = vld [vmem:[%s1113_s4 + $0x18] sm:$0xff] }
  0x9e   : > { %v425_v12 = vpop.f32.mrf.mxu0 }
  0x9f   : > { %v891_v12 = vld [vmem:[%s1113_s4 + $0x10] sm:$0xff] }
  0xa3   : > { %v556_v43 = vpop.permute.xlu0 %555 }
  0xa4   : > { %v561_v44 = vand.u32 %v556_v43, %v468_v25 }
  0xa6   : > { %570 = vmatpush.bf16.msrb.mxu3 %v561_v44 }
 0x10d   : > { %v432_v15 = vpop.xlane.xlu1 %431 }
 0x10e   : > { %v433_v16 = vmax.f32 %v428_v14, %v432_v15 }
 0x110   : > { %v434_v17 = vsub.f32 %v428_v14, %v433_v16  ;;  %488 = vst.msk [vmem:[#allocation2] sm:$0x7] %vm398_vm1, %v433_v16  ;;  %439 = vperm.xlu2 %927, %v433_v16   ;;  %v889_v14 = vld [vmem:[%s1113_s4] sm:$0xff] }
 0x112   : > { %v435_v27 = vmul.f32 1.442695, %v434_v17 }
 0x114   : > { %931 = vpow2.f32 %v435_v27 }
 0x11a   : > { %v932_v29 = vpop.eup %931 }
 0x11b   : > { %456 = vperm.xlu0 %928, %v932_v29   ;;  %v446_v46 = vmul.f32 %v932_v29, %v445_v45 }
 0x11f   : > { %v514_v18 = vpop.f32.mrf.mxu2 }
 0x120   : > { %v518_v19 = vmul.f32 0.125, %v514_v18 }
 0x122   : > { %v521_v20 = vsel %vm429_vm2, %v518_v19, -inf }
 0x123   : > { %522 = vmax.xlane.f32.xlu1 %v521_v20 }
 0x127   : > { %v516_v21 = vpop.f32.mrf.mxu2 }
 0x16a   : > { %v440_v30 = vpop.permute.xlu2 %439 }
 0x16b   : > { %v442_v31 = vsub.f32 %v427_v9, %v440_v30  ;;  %v894_v9 = vld [vmem:[%s1113_s4 + $0x28] sm:$0xff] }
 0x16c   : > { %679 = vmatpush.bf16.msra.mxu1 %v894_v9 }
 0x16d   : > { %v443_v33 = vmul.f32 1.442695, %v442_v31 }
 0x16f   : > { %933 = vpow2.f32 %v443_v33 }
 0x170   : > { %680 = vmatpush.bf16.msra.mxu1 %v893_v10 }
 0x174   : > { %681 = vmatpush.bf16.msra.mxu1 %v892_v11 }
 0x175   : > { %v934_v34 = vpop.eup %933 }
 0x176   : > { %v447_v35 = vsel %vm429_vm2, %v934_v34, 0.0  ;;  %v460_v36 = vpack.c.bf16 %v934_v34, %v934_v34 }
 0x177   : > { %448 = vadd.xlane.f32.xlu1 %v447_v35 }
 0x178   : > { %852 = vmatmul.msk.bf16.vlgmr.msra.gmra.mxu3 %vm461_vm5, %v460_v36  ;;  %682 = vmatpush.bf16.msra.mxu1 %v891_v12 }
 0x17c   : > { %683 = vmatpush.bf16.msra.mxu1 %v890_v13 }
 0x180   : > { %684 = vmatpush.bf16.msra.mxu1 %v889_v14 }
 0x18d   : > { %v457_v52 = vpop.permute.xlu0 %456 }
 0x18e   : > { %v459_v54 = vmul.f32 %v457_v52, %v453_v51 }
 0x196   : > { %v523_v38 = vpop.xlane.xlu1 %522 }
 0x197   : > { %v524_v39 = vmax.f32 %v520_v37, %v523_v38 }
 0x199   : > { %v525_v40 = vsub.f32 %v520_v37, %v524_v39  ;;  %583 = vst.msk [vmem:[#allocation2 + $0x4] sm:$0x7] %vm398_vm1, %v524_v39  ;;  %530 = vperm.xlu2 %927, %v524_v39  }
 0x19b   : > { %v526_v41 = vmul.f32 1.442695, %v525_v40 }
 0x19d   : > { %935 = vpow2.f32 %v526_v41 }
 0x1a3   : > { %v936_v42 = vpop.eup %935 }
 0x1a4   : > { %547 = vperm.xlu1 %929, %v936_v42   ;;  %v538_v62 = vmul.f32 %v936_v42, %v537_v61 }
 0x1ea   : > { %v449_v47 = vpop.xlane.xlu1 %448 }
 0x1eb   : > { %v450_v48 = vadd.f32 %v449_v47, %v446_v46 }
 0x1ed   : > { %452 = vst.msk [vmem:[#allocation3] sm:$0x7] %vm398_vm1, %v450_v48 }
 0x1f3   : > { %v531_v49 = vpop.permute.xlu2 %530 }
 0x1f4   : > { %v533_v50 = vsub.f32 %v518_v19, %v531_v49  ;;  %v588_v2 = vld [vmem:[#allocation3] sm:$0x7] }
 0x1f6   : > { %v534_v53 = vmul.f32 1.442695, %v533_v50 }
 0x1f8   : > { %937 = vpow2.f32 %v534_v53 }
 0x1fb   : > { %v481_v55 = vpop.f32.mrf.mxu3 }
 0x1fc   : > { %v485_v56 = vadd.f32 %v481_v55, %v459_v54 }
 0x1fe   : > { %v938_v57 = vpop.eup %937  ;;  %487 = vst.msk [vmem:[#allocation4] sm:$0x7] %vm486_vm6, %v485_v56 }
 0x1ff   : > { %v539_v58 = vsel %vm429_vm2, %v938_v57, 0.0  ;;  %v551_v59 = vpack.c.bf16 %v938_v57, %v938_v57 }
 0x200   : > { %540 = vadd.xlane.f32.xlu2 %v539_v58 }
 0x201   : > { %854 = vmatmul.msk.bf16.vlgmr.msrb.gmra.mxu3 %vm461_vm5, %v551_v59 }
 0x203   : > { %v483_v60 = vpop.f32.mrf.mxu3 }
 0x205   : > { %v544_v16 = vld [vmem:[#allocation4] sm:$0x7] }
 0x216   : > { %v548_v15 = vpop.permute.xlu1 %547 }
 0x217   : > { %v550_v17 = vmul.f32 %v548_v15, %v544_v16 }
 0x273   : > { %v541_v63 = vpop.xlane.xlu2 %540 }
 0x274   : > { %v542_v0 = vadd.f32 %v541_v63, %v538_v62 }
 0x276   : > { %543 = vst.msk [vmem:[#allocation3 + $0x4] sm:$0x7] %vm398_vm1, %v542_v0 }
 0x27d   : > { %v598_v1 = vld [vmem:[#allocation3 + $0x4] sm:$0x7] }
 0x27e   : > { %939 = vrcp.f32 %v598_v1 }
 0x27f   : > { %941 = vrcp.f32 %v588_v2 }
 0x284   : > { %v940_v3 = vpop.eup %939  ;;  %v572_v4 = vpop.f32.mrf.mxu3 }
 0x285   : > { %577 = vrot.lane.b32.xlu0 %v572_v4, %s967_s8  ;;  %602 = vperm.xlu1 %929, %v940_v3   ;;  %v942_v5 = vpop.eup %941  ;;  %s847_s8 = sshll.u32 %s1121_s21, 2 }
 0x286   : > { %s385_s11 = scalar_lea.vmem %s1112_s3, %s847_s8  ;;  %s392_s16 = scalar_lea.vmem %s1115_s6, %s847_s8 }
 0x287   : > { %v690_v30 = vld [vmem:[%s385_s11] sm:$0x7] }
 0x28c   : > { %v574_v6 = vpop.f32.mrf.mxu3 }
 0x28d   : > { %592 = vperm.xlu0 %928, %v942_v5  }
 0x2f7   : > { %v578_v18 = vpop.permute.xlu0 %577  ;;  %v603_v23 = vpop.permute.xlu1 %602 }
 0x2f8   : > { %v580_v19 = vadd.f32 %v578_v18, %v550_v17 }
 0x2fa   : > { %582 = vst.msk [vmem:[#allocation4] sm:$0x7] %vm581_vm7, %v580_v19 }
 0x2ff   : > { %v593_v20 = vpop.permute.xlu0 %592 }
 0x301   : > { %v587_v21 = vld [vmem:[#allocation4] sm:$0x7] }
 0x302   : > { %v595_v22 = vmul.f32 %v593_v20, %v587_v21 }
 0x304   : > { %596 = vst.msk [vmem:[#allocation4] sm:$0x7] %vm486_vm6, %v595_v22 }
 0x30b   : > { %v597_v24 = vld [vmem:[#allocation4] sm:$0x7] }
 0x30c   : > { %v605_v25 = vmul.f32 %v603_v23, %v597_v24 }
 0x30e   : > { %606 = vst.msk [vmem:[#allocation4] sm:$0x7] %vm581_vm7, %v605_v25 }
 0x315   : > { %v607_v26 = vld [vmem:[#allocation4] sm:$0x7] }
 0x316   : > { %v608_v27 = vpack.c.bf16 %v607_v26, %v607_v26 }
 0x318   : > { %685 = vmatmul.bf16.vlgmr.msra.gmra.mxu1 %v608_v27 }
 0x395   : > { %v686_v29 = vpop.f32.mrf.mxu1 }
 0x396   : > { %v687_v31 = vadd.f32 %v930_v28, %v686_v29 }
 0x398   : > { %v691_v32 = vadd.f32 %v690_v30, %v687_v31 }
 0x39a   : > { %692 = vst [vmem:[%s392_s16] sm:$0x7] %v691_v32 }
 0x39d   : > { %v688_v33 = vpop.f32.mrf.mxu1 }
 0x39e PF: > { %s16_s23 = sadd.s32 1, %s965_s23   ;;  %s1116_s21 = smov %s961_s22 }
 0x39f   : > { %p13_p5 = scmp.ge.s32.totalorder %s16_s23, 4   ;;  %s1117_s22 = smov %s1119_s24 }
 0x3a1   :  { %15 = sbr.rel (!%p13_p5) target bundleno = 2 (0x2), region = 93 }

// kernel: _lambda_.13
= control target key start
LH: loop header
LB: loop body
LE: loop exit
PB: predicated region body
PF: predicated region fallthrough
CT: control target
= control target key end

     0   :  { %s1079_s30 = smov 0   ;;  %s1081_s10 = smov 0   ;;  %s1301_s0 = inlined_call_operand.vmem [shape: f32[2,3,128], index: 0, kind: input, shape index: {}]   ;;  %s1302_s1 = inlined_call_operand.vmem [shape: f32[1,128], index: 1, kind: input, shape index: {}]   ;;  %s1303_s2 = inlined_call_operand.vmem [shape: f32[1,128], index: 2, kind: input, shape index: {}]   ;;  %s1304_s3 = inlined_call_operand.vmem [shape: bf16[128,256], index: 3, kind: input, shape index: {}]   ;;  %s1305_s4 = inlined_call_operand.vmem [shape: f32[1,256], index: 4, kind: input, shape index: {}]   ;;  %s1306_s5 = inlined_call_operand.vmem [shape: bf16[256,128], index: 5, kind: input, shape index: {}]   ;;  %s1307_s6 = inlined_call_operand.vmem [shape: f32[1,128], index: 6, kind: input, shape index: {}]   ;;  %s1308_s7 = inlined_call_operand.vmem [shape: f32[1,128], index: 7, kind: input, shape index: {}]   ;;  %s1309_s8 = inlined_call_operand.vmem [shape: f32[1,128], index: 8, kind: input, shape index: {}]   ;;  %s1310_s9 = inlined_call_operand.vmem [shape: f32[2,3,128], index: 9, kind: output, shape index: {}]  }
   0x1   :  { %s1083_s11 = smov 0  }
   0x2 LB: > { %s31_s12 = sadd.s32 1, %s1022_s10  ;;  %p803_p0 = scmp.ge.s32.totalorder %s1026_s11, 1  ;;  %s1026_s11 = sphi %s1083_s11, %s19_s11   ;;  %s1022_s10 = sphi %s1081_s10, %s1312_s10   ;;  %s1018_s30 = sphi %s1079_s30, %s1311_s30  }
   0x3   : > { %p33_p1 = scmp.ge.s32.totalorder %s31_s12, 2  ;;  %p305_p2 = scmp.lt.s32.totalorder %s1026_s11, 3 }
   0x5   : > { %s1314_s12 = smov (%p33_p1, %s31_s12), 0  ;;  %p306_p3 = pnand %p803_p0, %p305_p2 }
   0x6   : > { %p345_p4 = scmp.lt.s32.totalorder (!%p306_p3), %s1018_s30, 1 }
   0x7   : > { %309 = sbr.rel (%p306_p3) target bundleno = 825 (0x339), region = 56 }
   0xc   : > { %s1316_s30 = smov (!%p345_p4, %s1018_s30), 1  ;;  %vm362_vm0 = vcmask 1042432   ;;  %v1028_v2 = vmov 128.0   ;;  %v864_v3 = vld [vmem:[%s1304_s3 + $0x70] sm:$0xf]  ;;  %v959_v62 = vld [vmem:[%s1306_s5 + $0x38] sm:$0xff] }
   0xd   : > { %s804_s13 = sshll.u32 %s1316_s30, 2  ;;  %998 = vrcp.f32 %v1028_v2  ;;  %v951_v4 = vld [vmem:[%s1304_s3 + $0x74] sm:$0xf0]  ;;  %v950_v5 = vld [vmem:[%s1304_s3 + $0x74] sm:$0xf]  ;;  %665 = vmatpush.bf16.msra.mxu2 %v959_v62 }
   0xe   : > { %s351_s16 = scalar_lea.vmem %s1301_s0, %s804_s13  ;;  %v865_v6 = vor.u32 %v951_v4, %v864_v3  ;;  %v866_v7 = vld [vmem:[%s1304_s3 + $0x78] sm:$0xf0]  ;;  %v856_v20 = vld [vmem:[%s1304_s3 + $0x60] sm:$0xf]  ;;  %v949_v21 = vld [vmem:[%s1304_s3 + $0x64] sm:$0xf0]  ;;  %s358_s15 = scalar_lea.vmem %s1310_s9, %s804_s13 }
   0xf   : > { %v1105_v0 = vld [vmem:[%s351_s16] sm:$0x7]  ;;  %v869_v8 = vor.u32 %v950_v5, %v866_v7  ;;  %v948_v22 = vld [vmem:[%s1304_s3 + $0x64] sm:$0xf]  ;;  %v857_v23 = vor.u32 %v949_v21, %v856_v20  ;;  %v858_v24 = vld [vmem:[%s1304_s3 + $0x68] sm:$0xf0] }
  0x10   : > { %v363_v1 = vsel %vm362_vm0, %v1105_v0, 0.0  ;;  %503 = vmatpush.bf16.msra.mxu0 %v865_v6  ;;  %v861_v25 = vor.u32 %v948_v22, %v858_v24  ;;  %v848_v26 = vld [vmem:[%s1304_s3 + $0x50] sm:$0xf]  ;;  %v947_v27 = vld [vmem:[%s1304_s3 + $0x54] sm:$0xf0]  ;;  %v957_v6 = vld [vmem:[%s1306_s5 + $0x28] sm:$0xff] }
  0x11   : > { %364 = vadd.xlane.f32.xlu0 %v363_v1  ;;  %516 = vmatpush.bf16.msra.mxu1 %v869_v8  ;;  %v946_v28 = vld [vmem:[%s1304_s3 + $0x54] sm:$0xf]  ;;  %v849_v29 = vor.u32 %v947_v27, %v848_v26  ;;  %v850_v30 = vld [vmem:[%s1304_s3 + $0x58] sm:$0xf0]  ;;  %v840_v32 = vld [vmem:[%s1304_s3 + $0x40] sm:$0xf] }
  0x12   : > { %v853_v31 = vor.u32 %v946_v28, %v850_v30  ;;  %v945_v33 = vld [vmem:[%s1304_s3 + $0x44] sm:$0xf0]  ;;  %v944_v34 = vld [vmem:[%s1304_s3 + $0x44] sm:$0xf]  ;;  %v842_v36 = vld [vmem:[%s1304_s3 + $0x48] sm:$0xf0] }
  0x13   : > { %v999_v9 = vpop.eup %998  ;;  %v841_v35 = vor.u32 %v945_v33, %v840_v32  ;;  %v845_v37 = vor.u32 %v944_v34, %v842_v36  ;;  %v832_v38 = vld [vmem:[%s1304_s3 + $0x30] sm:$0xf]  ;;  %v943_v39 = vld [vmem:[%s1304_s3 + $0x34] sm:$0xf0]  ;;  %v942_v40 = vld [vmem:[%s1304_s3 + $0x34] sm:$0xf] }
  0x14   : > { %v367_v10 = vmul.f32 128.0, %v999_v9  ;;  %vm371_vm1 = vweird.f32 %v999_v9  ;;  %504 = vmatpush.bf16.msra.mxu0 %v857_v23  ;;  %v833_v41 = vor.u32 %v943_v39, %v832_v38  ;;  %v834_v42 = vld [vmem:[%s1304_s3 + $0x38] sm:$0xf0]  ;;  %v824_v44 = vld [vmem:[%s1304_s3 + $0x20] sm:$0xf]  ;;  %v958_v3 = vld [vmem:[%s1306_s5 + $0x30] sm:$0xff] }
  0x15   : > { %517 = vmatpush.bf16.msra.mxu1 %v861_v25  ;;  %v837_v43 = vor.u32 %v942_v40, %v834_v42  ;;  %v941_v45 = vld [vmem:[%s1304_s3 + $0x24] sm:$0xf0]  ;;  %v940_v46 = vld [vmem:[%s1304_s3 + $0x24] sm:$0xf]  ;;  %v826_v48 = vld [vmem:[%s1304_s3 + $0x28] sm:$0xf0]  ;;  %666 = vmatpush.bf16.msra.mxu2 %v958_v3 }
  0x16   : > { %v368_v11 = vsub.f32 1.0, %v367_v10  ;;  %v825_v47 = vor.u32 %v941_v45, %v824_v44  ;;  %v829_v49 = vor.u32 %v940_v46, %v826_v48  ;;  %v816_v50 = vld [vmem:[%s1304_s3 + $0x10] sm:$0xf]  ;;  %v939_v51 = vld [vmem:[%s1304_s3 + $0x14] sm:$0xf0]  ;;  %v965_v7 = vld [vmem:[%s1306_s5 + $0x68] sm:$0xff] }
  0x17   : > { %v938_v52 = vld [vmem:[%s1304_s3 + $0x14] sm:$0xf]  ;;  %v817_v53 = vor.u32 %v939_v51, %v816_v50  ;;  %v818_v54 = vld [vmem:[%s1304_s3 + $0x18] sm:$0xf0]  ;;  %v808_v55 = vld [vmem:[%s1304_s3] sm:$0xf] }
  0x18   : > { %v369_v12 = vmul.f32 %v999_v9, %v368_v11  ;;  %505 = vmatpush.bf16.msra.mxu0 %v849_v29  ;;  %v937_v56 = vld [vmem:[%s1304_s3 + $0x4] sm:$0xf0]  ;;  %v821_v57 = vor.u32 %v938_v52, %v818_v54  ;;  %v936_v58 = vld [vmem:[%s1304_s3 + $0x4] sm:$0xf]  ;;  %v810_v59 = vld [vmem:[%s1304_s3 + $0x8] sm:$0xf0] }
  0x19   : > { %518 = vmatpush.bf16.msra.mxu1 %v853_v31  ;;  %v809_v60 = vor.u32 %v937_v56, %v808_v55  ;;  %v813_v61 = vor.u32 %v936_v58, %v810_v59  ;;  %v967_v63 = vld [vmem:[%s1306_s5 + $0x78] sm:$0xff]  ;;  %v966_v4 = vld [vmem:[%s1306_s5 + $0x70] sm:$0xff]  ;;  %667 = vmatpush.bf16.msra.mxu2 %v957_v6  ;;  %v956_v8 = vld [vmem:[%s1306_s5 + $0x20] sm:$0xff] }
  0x1a   : > { %v370_v13 = vadd.f32 %v999_v9, %v369_v12  ;;  %678 = vmatpush.bf16.msra.mxu3 %v967_v63  ;;  %v955_v12 = vld [vmem:[%s1306_s5 + $0x18] sm:$0xff]  ;;  %v993_v22 = vld [vmem:[%s1302_s1] ss:$0 sm:$0xff]  ;;  %v953_v29 = vld [vmem:[%s1306_s5 + $0x8] sm:$0xff] }
  0x1b   : > { %v994_v25 = vld [vmem:[%s1303_s2] ss:$0 sm:$0xff]  ;;  %v961_v30 = vld [vmem:[%s1306_s5 + $0x48] sm:$0xff] }
  0x1c   : > { %v1121_v14 = vsel %vm371_vm1, %v999_v9, %v370_v13  ;;  %506 = vmatpush.bf16.msra.mxu0 %v841_v35  ;;  %v964_v9 = vld [vmem:[%s1306_s5 + $0x60] sm:$0xff]  ;;  %v963_v13 = vld [vmem:[%s1306_s5 + $0x58] sm:$0xff] }
  0x1d   : > { %519 = vmatpush.bf16.msra.mxu1 %v845_v37  ;;  %668 = vmatpush.bf16.msra.mxu2 %v956_v8  ;;  %v960_v31 = vld [vmem:[%s1306_s5 + $0x40] sm:$0xff] }
  0x1e   : > { %679 = vmatpush.bf16.msra.mxu3 %v966_v4  ;;  %v417_v32 = vld [vmem:[%s1305_s4] sm:$0x3] }
  0x1f   : > { %v419_v33 = vperm.slane %v417_v32, 0  ;;  %v420_v34 = vperm.slane %v417_v32, 1  ;;  %v995_v45 = vld [vmem:[%s1307_s6] ss:$0 sm:$0xff] }
  0x20   : > { %507 = vmatpush.bf16.msra.mxu0 %v833_v41  ;;  %v996_v4 = vld [vmem:[%s1308_s7] ss:$0 sm:$0xff] }
  0x21   : > { %520 = vmatpush.bf16.msra.mxu1 %v837_v43  ;;  %669 = vmatpush.bf16.msra.mxu2 %v955_v12 }
  0x22   : > { %680 = vmatpush.bf16.msra.mxu3 %v965_v7 }
  0x24   : > { %508 = vmatpush.bf16.msra.mxu0 %v825_v47 }
  0x25   : > { %521 = vmatpush.bf16.msra.mxu1 %v829_v49 }
  0x26   : > { %681 = vmatpush.bf16.msra.mxu3 %v964_v9 }
  0x28   : > { %509 = vmatpush.bf16.msra.mxu0 %v817_v53 }
  0x29   : > { %522 = vmatpush.bf16.msra.mxu1 %v821_v57 }
  0x2a   : > { %682 = vmatpush.bf16.msra.mxu3 %v963_v13 }
  0x2c   : > { %510 = vmatpush.bf16.msra.mxu0 %v809_v60 }
  0x2d   : > { %523 = vmatpush.bf16.msra.mxu1 %v813_v61 }
  0x84   : > { %v365_v15 = vpop.xlane.xlu0 %364 }
  0x85   : > { %v373_v16 = vmul.f32 %v1121_v14, %v365_v15 }
  0x87   : > { %v1125_v17 = vsub.f32 %v1105_v0, %v373_v16 }
  0x89   : > { %v375_v18 = vmul.f32 %v1125_v17, %v1125_v17 }
  0x8b   : > { %v376_v19 = vsel %vm362_vm0, %v375_v18, 0.0  ;;  %v954_v18 = vld [vmem:[%s1306_s5 + $0x10] sm:$0xff] }
  0x8c   : > { %377 = vadd.xlane.f32.xlu0 %v376_v19  ;;  %v962_v19 = vld [vmem:[%s1306_s5 + $0x50] sm:$0xff]  ;;  %670 = vmatpush.bf16.msra.mxu2 %v954_v18 }
  0x8d   : > { %683 = vmatpush.bf16.msra.mxu3 %v962_v19 }
  0x90   : > { %671 = vmatpush.bf16.msra.mxu2 %v953_v29 }
  0x91   : > { %684 = vmatpush.bf16.msra.mxu3 %v961_v30 }
  0x95   : > { %685 = vmatpush.bf16.msra.mxu3 %v960_v31 }
  0xff   : > { %v378_v1 = vpop.xlane.xlu0 %377 }
 0x100   : > { %v379_v2 = vmul.f32 %v378_v1, %v1121_v14 }
 0x102   : > { %v380_v5 = vadd.f32 1e-12, %v379_v2 }
 0x104   : > { %1000 = vrsqrt.f32 %v380_v5  ;;  %vm387_vm3 = vweird.f32 %v380_v5 }
 0x10a   : > { %v1001_v10 = vpop.eup %1000 }
 0x10b   : > { %v382_v11 = vmul.f32 %v1001_v10, %v380_v5  ;;  %vm388_vm2 = vweird.f32 %v1001_v10 }
 0x10c   : > { %vm389_vm4 = vmor %vm387_vm3, %vm388_vm2 }
 0x10d   : > { %v383_v15 = vmul.f32 %v1001_v10, %v382_v11 }
 0x10f   : > { %v384_v16 = vmul.f32 0.5, %v383_v15 }
 0x111   : > { %v385_v20 = vsub.f32 1.5, %v384_v16 }
 0x113   : > { %v386_v21 = vmul.f32 %v1001_v10, %v385_v20 }
 0x115   : > { %v390_v23 = vsel %vm389_vm4, %v1001_v10, %v386_v21 }
 0x116   : > { %v391_v24 = vmul.f32 %v390_v23, %v1125_v17  ;;  %v952_v17 = vld [vmem:[%s1306_s5] sm:$0xff] }
 0x117   : > { %672 = vmatpush.bf16.msra.mxu2 %v952_v17 }
 0x118   : > { %v395_v26 = vmul.f32 %v993_v22, %v391_v24 }
 0x11a   : > { %v399_v27 = vadd.f32 %v994_v25, %v395_v26 }
 0x11c   : > { %v400_v28 = vpack.c.bf16 %v399_v27, %v399_v27 }
 0x11e   : > { %511 = vmatmul.bf16.vlgmr.msra.gmra.mxu0 %v400_v28  ;;  %524 = vmatmul.bf16.vlgmr.msra.gmra.mxu1 %v400_v28 }
 0x19b   : > { %v512_v35 = vpop.f32.mrf.mxu0  ;;  %v525_v36 = vpop.f32.mrf.mxu1 }
 0x19c   : > { %v513_v37 = vadd.f32 %v512_v35, %v419_v33  ;;  %v526_v38 = vadd.f32 %v525_v36, %v420_v34 }
 0x19e   : > { %v529_v39 = vmax.f32 %v513_v37, 0.0  ;;  %v530_v40 = vmax.f32 %v526_v38, 0.0 }
 0x1a0   : > { %v531_v41 = vpack.c.bf16 %v529_v39, %v529_v39  ;;  %v532_v42 = vpack.c.bf16 %v530_v40, %v530_v40 }
 0x1a2   : > { %673 = vmatmul.bf16.vlgmr.msra.gmra.mxu2 %v531_v41  ;;  %686 = vmatmul.bf16.vlgmr.msra.gmra.mxu3 %v532_v42 }
 0x1a3   : > { %v514_v43 = vpop.f32.mrf.mxu0  ;;  %v527_v44 = vpop.f32.mrf.mxu1 }
 0x225   : > { %v674_v46 = vpop.f32.mrf.mxu2  ;;  %v687_v47 = vpop.f32.mrf.mxu3 }
 0x226   : > { %v675_v48 = vadd.f32 %v995_v45, %v674_v46 }
 0x228   : > { %v688_v49 = vadd.f32 %v687_v47, %v675_v48 }
 0x22a   : > { %v691_v50 = vadd.f32 %v688_v49, %v1105_v0 }
 0x22c   : > { %v694_v51 = vsel %vm362_vm0, %v691_v50, 0.0 }
 0x22d   : > { %v676_v52 = vpop.f32.mrf.mxu2  ;;  %v689_v53 = vpop.f32.mrf.mxu3  ;;  %695 = vadd.xlane.f32.xlu1 %v694_v51 }
 0x2a0   : > { %v696_v54 = vpop.xlane.xlu1 %695 }
 0x2a1   : > { %v697_v55 = vmul.f32 %v696_v54, %v1121_v14 }
 0x2a3   : > { %v698_v56 = vsub.f32 %v691_v50, %v697_v55 }
 0x2a5   : > { %v699_v57 = vmul.f32 %v698_v56, %v698_v56 }
 0x2a7   : > { %v700_v58 = vsel %vm362_vm0, %v699_v57, 0.0 }
 0x2a8   : > { %701 = vadd.xlane.f32.xlu1 %v700_v58 }
 0x31b   : > { %v702_v59 = vpop.xlane.xlu1 %701 }
 0x31c   : > { %v703_v60 = vmul.f32 %v702_v59, %v1121_v14  ;;  %v997_v14 = vld [vmem:[%s1309_s8] ss:$0 sm:$0xff] }
 0x31e   : > { %v704_v61 = vadd.f32 1e-12, %v703_v60 }
 0x320   : > { %1002 = vrsqrt.f32 %v704_v61  ;;  %vm711_vm6 = vweird.f32 %v704_v61 }
 0x326   : > { %v1003_v0 = vpop.eup %1002 }
 0x327   : > { %v706_v62 = vmul.f32 %v1003_v0, %v704_v61  ;;  %vm712_vm5 = vweird.f32 %v1003_v0 }
 0x328   : > { %vm713_vm7 = vmor %vm711_vm6, %vm712_vm5 }
 0x329   : > { %v707_v63 = vmul.f32 %v1003_v0, %v706_v62 }
 0x32b   : > { %v708_v1 = vmul.f32 0.5, %v707_v63 }
 0x32d   : > { %v709_v2 = vsub.f32 1.5, %v708_v1 }
 0x32f   : > { %v710_v3 = vmul.f32 %v1003_v0, %v709_v2 }
 0x331   : > { %v714_v5 = vsel %vm713_vm7, %v1003_v0, %v710_v3 }
 0x332   : > { %v715_v6 = vmul.f32 %v714_v5, %v698_v56 }
 0x334   : > { %v719_v7 = vmul.f32 %v996_v4, %v715_v6 }
 0x336   : > { %v723_v8 = vadd.f32 %v997_v14, %v719_v7 }
 0x338   : > { %724 = vst [vmem:[%s358_s15] sm:$0x7] %v723_v8 }
 0x339 PF: > { %s19_s11 = sadd.s32 1, %s1026_s11   ;;  %s1311_s30 = smov %s1022_s10 }
 0x33a   : > { %p16_p5 = scmp.ge.s32.totalorder %s19_s11, 4   ;;  %s1312_s10 = smov %s1314_s12 }
 0x33c   :  { %18 = sbr.rel (!%p16_p5) target bundleno = 2 (0x2), region = 86 }

</bundles_post_ra>
